<compile_context>
chip_gen: v7x
topology: tpu7x:2x2x1
jax: 0.10.0
libtpu: 0.0.40
codegen_flags: <defaults>
</compile_context>

<pallas_src>
import functools

import jax
import jax.numpy as jnp
from jax.experimental import pallas as pl
from jax.experimental.pallas import tpu as pltpu


def _round_up(x, m):
    return (x + m - 1) // m * m


# ----------------------------------------------------------------------------
# Fused MLP kernel (channels-first).  Per (batch, point-tile) grid step:
#   h (Kp0, tn) -> [W_l @ h + b_l, ReLU] ... -> o (num_classes, tn)
# refs = (w1, b1, w2, b2, ..., wL, bL, o_ref); weights are (out_pad, in_pad) bf16.
# ----------------------------------------------------------------------------
def _mlp_kernel(x_ref, *refs, num_layers, num_classes):
    o_ref = refs[-1]
    h = x_ref[...].astype(jnp.bfloat16)                     # (Kp0, tn) bf16 for MXU
    for li in range(num_layers):
        w = refs[2 * li][...]                               # bf16 (Np_l, Kp_l), VMEM-resident
        b = refs[2 * li + 1][...]                           # f32  (Np_l, 1)
        y = jnp.dot(w, h, preferred_element_type=jnp.float32) + b
        if li < num_layers - 1:
            h = jnp.maximum(y, 0.0).astype(jnp.bfloat16)    # ReLU, back to bf16 for MXU
        else:
            o_ref[...] = y[:num_classes, :]                 # final: no activation, f32 out


@functools.lru_cache(maxsize=None)
def _build_mlp_call(B, Np, tn, num_classes, layer_dims):
    """layer_dims: tuple of (Kp_l, Np_l) padded (in, out) channels per layer."""
    num_layers = len(layer_dims)
    kp0 = layer_dims[0][0]

    # Activations: tiled over (batch, point-tile); lanes = point index (lane-dense).
    in_specs = [pl.BlockSpec((None, kp0, tn), lambda b, n: (b, 0, n))]
    # Weights / biases: full blocks with constant index_map -> stay VMEM-resident.
    # (pipeline_mode=pl.Buffered(1) would drop their double buffer; at ~0.3 MiB the
    #  default is left alone for robustness.)
    for (kp, np_) in layer_dims:
        in_specs.append(pl.BlockSpec((np_, kp), lambda b, n: (0, 0)))
        in_specs.append(pl.BlockSpec((np_, 1), lambda b, n: (0, 0)))

    flops = 2 * B * Np * sum(kp * np_ for kp, np_ in layer_dims)
    bytes_accessed = (B * kp0 * Np * 2 + B * num_classes * Np * 4
                      + sum(kp * np_ * 2 + np_ * 4 for kp, np_ in layer_dims))

    return pl.pallas_call(
        functools.partial(_mlp_kernel, num_layers=num_layers, num_classes=num_classes),
        out_shape=jax.ShapeDtypeStruct((B, num_classes, Np), jnp.float32),
        grid_spec=pltpu.PrefetchScalarGridSpec(
            num_scalar_prefetch=0,
            grid=(B, Np // tn),
            in_specs=in_specs,
            out_specs=pl.BlockSpec((None, num_classes, tn), lambda b, n: (b, 0, n)),
        ),
        compiler_params=pltpu.CompilerParams(
            dimension_semantics=("parallel", "parallel"),
            vmem_limit_bytes=32 * 1024 * 1024),
        cost_estimate=pl.CostEstimate(flops=flops, transcendentals=0,
                                      bytes_accessed=bytes_accessed),
    )


def _pick_point_tile(N):
    """Point (lane) tile: a single tile when N <= 512, else 512-wide tiles.
    512 lanes fill the 256-wide MXU RHS on v6e/v7x and amortize per-step overhead;
    weights are VMEM-resident so fatter tiles cost only the activation DMA."""
    Np = _round_up(N, 128)
    if Np <= 512:
        return Np, Np
    tn = 512
    return tn, _round_up(N, tn)


# ----------------------------------------------------------------------------
# Parameters: PyTorch-style Conv1d(k=1) init, pre-padded / pre-cast for the kernel.
# ----------------------------------------------------------------------------
def make_mlp_params(key, fc_dim_in, fc_dims, num_classes):
    dims_out = list(fc_dims) + [num_classes]
    num_layers = len(dims_out)
    raw_layers = []                 # [(w (out,in) f32, b (out,) f32), ...]  reference
    weights_p, biases_p, layer_dims = [], [], []
    d_in = fc_dim_in
    for li, d_out in enumerate(dims_out):
        key, kw, kb = jax.random.split(key, 3)
        bound = 1.0 / (d_in ** 0.5)
        w = jax.random.uniform(kw, (d_out, d_in), jnp.float32, -bound, bound)
        b = jax.random.uniform(kb, (d_out,), jnp.float32, -bound, bound)
        raw_layers.append((w, b))

        kp = _round_up(d_in, 128)   # contraction dims 128-aligned (zero pad is inert)
        # Hidden widths stay 128-aligned (they are the next layer's K); the class
        # head only needs sublane (8) alignment -- its rows are sliced in-kernel.
        np_ = _round_up(d_out, 8) if li == num_layers - 1 else _round_up(d_out, 128)
        wp = jnp.zeros((np_, kp), jnp.float32).at[:d_out, :d_in].set(w)
        weights_p.append(wp.astype(jnp.bfloat16))                    # padded + bf16, once
        biases_p.append(jnp.zeros((np_, 1), jnp.float32).at[:d_out, 0].set(b))
        layer_dims.append((kp, np_))
        d_in = d_out
    return raw_layers, weights_p, biases_p, tuple(layer_dims)


# ----------------------------------------------------------------------------
# Forward: x (B, Cin, N)  ->  (B, num_classes, N), native channels-first layout.
# ----------------------------------------------------------------------------
def pallas_mlp_forward(weights_p, biases_p, x, *, layer_dims, num_classes):
    B, Cin, N = x.shape
    kp0 = layer_dims[0][0]
    tn, Np = _pick_point_tile(N)

    if kp0 != Cin or Np != N:
        # Single fused pad+cast in bf16 (zero channel/point padding is numerically inert).
        xk = jnp.pad(x.astype(jnp.bfloat16), ((0, 0), (0, kp0 - Cin), (0, Np - N)))
    else:
        xk = x                                               # no wrapper glue at all

    args = [xk]
    for w, b in zip(weights_p, biases_p):
        args.append(w)
        args.append(b)

    out = _build_mlp_call(B, Np, tn, num_classes, layer_dims)(*args)
    if Np != N:
        out = out[:, :, :N]
    return out


# ----------------------------------------------------------------------------
# Pure-JAX f32 reference (matches nn.Sequential of Conv1d(k=1)+ReLU ... + final fc)
# ----------------------------------------------------------------------------
def reference_mlp(raw_layers, x):
    h = x                                                    # (B, Cin, N)
    L = len(raw_layers)
    for li, (w, b) in enumerate(raw_layers):
        h = jnp.einsum('oc,bcn->bon', w, h, precision='highest') + b[None, :, None]
        if li < L - 1:
            h = jnp.maximum(h, 0.0)
    return h


# ----------------------------------------------------------------------------
if __name__ == "__main__":
    key = jax.random.PRNGKey(0)
    kparam, kx = jax.random.split(key)

    # Small shapes consistent with how RendUNet uses MLP (per-point features):
    # MLP(fc_dim_in=67, fc_dims=[256, 256, 256], num_classes=3) on (B, C, N) points.
    fc_dim_in, fc_dims, num_classes = 67, (256, 256, 256), 3
    B, N = 2, 128

    raw_layers, weights_p, biases_p, layer_dims = make_mlp_params(
        kparam, fc_dim_in, fc_dims, num_classes)
    x = jax.random.normal(kx, (B, fc_dim_in, N), jnp.float32)

    fwd = jax.jit(functools.partial(
        pallas_mlp_forward, layer_dims=layer_dims, num_classes=num_classes))

    out = jax.block_until_ready(fwd(weights_p, biases_p, x))
    assert out.shape == (B, num_classes, N), out.shape
    assert bool(jnp.all(jnp.isfinite(out)))

    # Correctness vs f32 reference (bf16 MXU operands, f32 accumulation -> loose tol).
    ref = reference_mlp(raw_layers, x)
    max_err = float(jnp.max(jnp.abs(out - ref)))
    scale = float(jnp.max(jnp.abs(ref))) + 1e-6
    assert max_err <= 0.05 * scale + 1e-3, (max_err, scale)

    print("KERNEL_OK")
</pallas_src>

<mosaic_0001>
module attributes {stable_mosaic.version = 11 : i64} {
  func.func @_mlp_kernel(%arg0: i32, %arg1: i32, %arg2: memref<1x128x128xbf16, #tpu.memory_space<vmem>>, %arg3: memref<256x128xbf16, #tpu.memory_space<vmem>>, %arg4: memref<256x1xf32, #tpu.memory_space<vmem>>, %arg5: memref<256x256xbf16, #tpu.memory_space<vmem>>, %arg6: memref<256x1xf32, #tpu.memory_space<vmem>>, %arg7: memref<256x256xbf16, #tpu.memory_space<vmem>>, %arg8: memref<256x1xf32, #tpu.memory_space<vmem>>, %arg9: memref<8x256xbf16, #tpu.memory_space<vmem>>, %arg10: memref<8x1xf32, #tpu.memory_space<vmem>>, %arg11: memref<1x3x128xf32, #tpu.memory_space<vmem>>) attributes {dimension_semantics = [#tpu.dimension_semantics<parallel>, #tpu.dimension_semantics<parallel>], iteration_bounds = array<i64: 2, 1>, scalar_prefetch = 0 : i64, scratch_operands = 0 : i64, tpu.core_type = #tpu.core_type<tc>, window_params = [{transform_indices = @transform_0, window_bounds = array<i64: 1, 128, 128>}, {pipeline_mode = #tpu.pipeline_mode<synchronous>, transform_indices = @transform_1, window_bounds = array<i64: 256, 128>}, {pipeline_mode = #tpu.pipeline_mode<synchronous>, transform_indices = @transform_2, window_bounds = array<i64: 256, 1>}, {pipeline_mode = #tpu.pipeline_mode<synchronous>, transform_indices = @transform_3, window_bounds = array<i64: 256, 256>}, {pipeline_mode = #tpu.pipeline_mode<synchronous>, transform_indices = @transform_4, window_bounds = array<i64: 256, 1>}, {pipeline_mode = #tpu.pipeline_mode<synchronous>, transform_indices = @transform_5, window_bounds = array<i64: 256, 256>}, {pipeline_mode = #tpu.pipeline_mode<synchronous>, transform_indices = @transform_6, window_bounds = array<i64: 256, 1>}, {pipeline_mode = #tpu.pipeline_mode<synchronous>, transform_indices = @transform_7, window_bounds = array<i64: 8, 256>}, {pipeline_mode = #tpu.pipeline_mode<synchronous>, transform_indices = @transform_8, window_bounds = array<i64: 8, 1>}, {transform_indices = @transform_9, window_bounds = array<i64: 1, 3, 128>}]} {
    %c0 = arith.constant 0 : index
    %c0_0 = arith.constant 0 : index
    %c0_1 = arith.constant 0 : index
    %0 = vector.load %arg2[%c0, %c0_0, %c0_1] : memref<1x128x128xbf16, #tpu.memory_space<vmem>>, vector<1x128x128xbf16>
    %1 = vector.shape_cast %0 : vector<1x128x128xbf16> to vector<128x128xbf16>
    %c0_2 = arith.constant 0 : index
    %c0_3 = arith.constant 0 : index
    %2 = vector.load %arg3[%c0_2, %c0_3] : memref<256x128xbf16, #tpu.memory_space<vmem>>, vector<256x128xbf16>
    %c0_4 = arith.constant 0 : index
    %c0_5 = arith.constant 0 : index
    %3 = vector.load %arg4[%c0_4, %c0_5] : memref<256x1xf32, #tpu.memory_space<vmem>>, vector<256x1xf32>
    %cst = arith.constant dense<0.000000e+00> : vector<256x128xf32>
    %4 = tpu.matmul %2, %1, %cst {dimension_numbers = #tpu.dot_dimension_numbers<[1], [0], [0], [1], [0, 0, 1, 1], [], []>} : vector<256x128xbf16>, vector<128x128xbf16>, vector<256x128xf32> -> vector<256x128xf32>
    %5 = vector.broadcast %3 : vector<256x1xf32> to vector<256x128xf32>
    %6 = arith.addf %4, %5 : vector<256x128xf32>
    %cst_6 = arith.constant 0.000000e+00 : f32
    %7 = vector.broadcast %cst_6 : f32 to vector<256x128xf32>
    %8 = arith.maximumf %6, %7 : vector<256x128xf32>
    %9 = arith.truncf %8 : vector<256x128xf32> to vector<256x128xbf16>
    %c0_7 = arith.constant 0 : index
    %c0_8 = arith.constant 0 : index
    %10 = vector.load %arg5[%c0_7, %c0_8] : memref<256x256xbf16, #tpu.memory_space<vmem>>, vector<256x256xbf16>
    %c0_9 = arith.constant 0 : index
    %c0_10 = arith.constant 0 : index
    %11 = vector.load %arg6[%c0_9, %c0_10] : memref<256x1xf32, #tpu.memory_space<vmem>>, vector<256x1xf32>
    %cst_11 = arith.constant dense<0.000000e+00> : vector<256x128xf32>
    %12 = tpu.matmul %10, %9, %cst_11 {dimension_numbers = #tpu.dot_dimension_numbers<[1], [0], [0], [1], [0, 0, 1, 1], [], []>} : vector<256x256xbf16>, vector<256x128xbf16>, vector<256x128xf32> -> vector<256x128xf32>
    %13 = vector.broadcast %11 : vector<256x1xf32> to vector<256x128xf32>
    %14 = arith.addf %12, %13 : vector<256x128xf32>
    %cst_12 = arith.constant 0.000000e+00 : f32
    %15 = vector.broadcast %cst_12 : f32 to vector<256x128xf32>
    %16 = arith.maximumf %14, %15 : vector<256x128xf32>
    %17 = arith.truncf %16 : vector<256x128xf32> to vector<256x128xbf16>
    %c0_13 = arith.constant 0 : index
    %c0_14 = arith.constant 0 : index
    %18 = vector.load %arg7[%c0_13, %c0_14] : memref<256x256xbf16, #tpu.memory_space<vmem>>, vector<256x256xbf16>
    %c0_15 = arith.constant 0 : index
    %c0_16 = arith.constant 0 : index
    %19 = vector.load %arg8[%c0_15, %c0_16] : memref<256x1xf32, #tpu.memory_space<vmem>>, vector<256x1xf32>
    %cst_17 = arith.constant dense<0.000000e+00> : vector<256x128xf32>
    %20 = tpu.matmul %18, %17, %cst_17 {dimension_numbers = #tpu.dot_dimension_numbers<[1], [0], [0], [1], [0, 0, 1, 1], [], []>} : vector<256x256xbf16>, vector<256x128xbf16>, vector<256x128xf32> -> vector<256x128xf32>
    %21 = vector.broadcast %19 : vector<256x1xf32> to vector<256x128xf32>
    %22 = arith.addf %20, %21 : vector<256x128xf32>
    %cst_18 = arith.constant 0.000000e+00 : f32
    %23 = vector.broadcast %cst_18 : f32 to vector<256x128xf32>
    %24 = arith.maximumf %22, %23 : vector<256x128xf32>
    %25 = arith.truncf %24 : vector<256x128xf32> to vector<256x128xbf16>
    %c0_19 = arith.constant 0 : index
    %c0_20 = arith.constant 0 : index
    %26 = vector.load %arg9[%c0_19, %c0_20] : memref<8x256xbf16, #tpu.memory_space<vmem>>, vector<8x256xbf16>
    %c0_21 = arith.constant 0 : index
    %c0_22 = arith.constant 0 : index
    %27 = vector.load %arg10[%c0_21, %c0_22] : memref<8x1xf32, #tpu.memory_space<vmem>>, vector<8x1xf32>
    %cst_23 = arith.constant dense<0.000000e+00> : vector<8x128xf32>
    %28 = tpu.matmul %26, %25, %cst_23 {dimension_numbers = #tpu.dot_dimension_numbers<[1], [0], [0], [1], [0, 0, 1, 1], [], []>} : vector<8x256xbf16>, vector<256x128xbf16>, vector<8x128xf32> -> vector<8x128xf32>
    %29 = vector.broadcast %27 : vector<8x1xf32> to vector<8x128xf32>
    %30 = arith.addf %28, %29 : vector<8x128xf32>
    %31 = vector.extract_strided_slice %30 {offsets = [0, 0], sizes = [3, 128], strides = [1, 1]} : vector<8x128xf32> to vector<3x128xf32>
    %c0_24 = arith.constant 0 : index
    %c0_25 = arith.constant 0 : index
    %c0_26 = arith.constant 0 : index
    %32 = vector.load %arg11[%c0_24, %c0_25, %c0_26] : memref<1x3x128xf32, #tpu.memory_space<vmem>>, vector<1x3x128xf32>
    %33 = vector.shape_cast %32 : vector<1x3x128xf32> to vector<3x128xf32>
    %34 = vector.shape_cast %31 : vector<3x128xf32> to vector<1x3x128xf32>
    tpu.vector_store %arg11[%c0_24, %c0_25, %c0_26], %34 {strides = array<i32>} : memref<1x3x128xf32, #tpu.memory_space<vmem>>, vector<1x3x128xf32>,
    return
  }
  func.func @transform_0(%arg0: i32, %arg1: i32) -> (i32, i32, i32) {
    %c0_i32 = arith.constant 0 : i32
    %c0_i32_0 = arith.constant 0 : i32
    return %arg0, %c0_i32, %arg1 : i32, i32, i32
  }
  func.func @transform_1(%arg0: i32, %arg1: i32) -> (i32, i32) {
    %c0_i32 = arith.constant 0 : i32
    %c0_i32_0 = arith.constant 0 : i32
    %c0_i32_1 = arith.constant 0 : i32
    return %c0_i32, %c0_i32_0 : i32, i32
  }
  func.func @transform_2(%arg0: i32, %arg1: i32) -> (i32, i32) {
    %c0_i32 = arith.constant 0 : i32
    %c0_i32_0 = arith.constant 0 : i32
    %c0_i32_1 = arith.constant 0 : i32
    return %c0_i32, %c0_i32_0 : i32, i32
  }
  func.func @transform_3(%arg0: i32, %arg1: i32) -> (i32, i32) {
    %c0_i32 = arith.constant 0 : i32
    %c0_i32_0 = arith.constant 0 : i32
    %c0_i32_1 = arith.constant 0 : i32
    return %c0_i32, %c0_i32_0 : i32, i32
  }
  func.func @transform_4(%arg0: i32, %arg1: i32) -> (i32, i32) {
    %c0_i32 = arith.constant 0 : i32
    %c0_i32_0 = arith.constant 0 : i32
    %c0_i32_1 = arith.constant 0 : i32
    return %c0_i32, %c0_i32_0 : i32, i32
  }
  func.func @transform_5(%arg0: i32, %arg1: i32) -> (i32, i32) {
    %c0_i32 = arith.constant 0 : i32
    %c0_i32_0 = arith.constant 0 : i32
    %c0_i32_1 = arith.constant 0 : i32
    return %c0_i32, %c0_i32_0 : i32, i32
  }
  func.func @transform_6(%arg0: i32, %arg1: i32) -> (i32, i32) {
    %c0_i32 = arith.constant 0 : i32
    %c0_i32_0 = arith.constant 0 : i32
    %c0_i32_1 = arith.constant 0 : i32
    return %c0_i32, %c0_i32_0 : i32, i32
  }
  func.func @transform_7(%arg0: i32, %arg1: i32) -> (i32, i32) {
    %c0_i32 = arith.constant 0 : i32
    %c0_i32_0 = arith.constant 0 : i32
    %c0_i32_1 = arith.constant 0 : i32
    return %c0_i32, %c0_i32_0 : i32, i32
  }
  func.func @transform_8(%arg0: i32, %arg1: i32) -> (i32, i32) {
    %c0_i32 = arith.constant 0 : i32
    %c0_i32_0 = arith.constant 0 : i32
    %c0_i32_1 = arith.constant 0 : i32
    return %c0_i32, %c0_i32_0 : i32, i32
  }
  func.func @transform_9(%arg0: i32, %arg1: i32) -> (i32, i32, i32) {
    %c0_i32 = arith.constant 0 : i32
    %c0_i32_0 = arith.constant 0 : i32
    return %arg0, %c0_i32, %arg1 : i32, i32, i32
  }
}

</mosaic_0001>

<bundles_post_ra>
// kernel: pallas_mlp_forward.1
= control target key start
LH: loop header
LB: loop body
LE: loop exit
PB: predicated region body
PF: predicated region fallthrough
CT: control target
= control target key end

     0   :  { %s2933_s30 = smov 0   ;;  %s2935_s10 = smov 0   ;;  %s3703_s0 = inlined_call_operand.vmem [shape: bf16[2,128,128], index: 0, kind: input, shape index: {}]   ;;  %s3704_s1 = inlined_call_operand.vmem [shape: bf16[256,128], index: 1, kind: input, shape index: {}]   ;;  %s3705_s2 = inlined_call_operand.vmem [shape: f32[256,1], index: 2, kind: input, shape index: {}]   ;;  %s3706_s3 = inlined_call_operand.vmem [shape: bf16[256,256], index: 3, kind: input, shape index: {}]   ;;  %s3707_s4 = inlined_call_operand.vmem [shape: f32[256,1], index: 4, kind: input, shape index: {}]   ;;  %s3708_s5 = inlined_call_operand.vmem [shape: bf16[256,256], index: 5, kind: input, shape index: {}]   ;;  %s3709_s6 = inlined_call_operand.vmem [shape: f32[256,1], index: 6, kind: input, shape index: {}]   ;;  %s3710_s7 = inlined_call_operand.vmem [shape: bf16[8,256], index: 7, kind: input, shape index: {}]   ;;  %s3711_s8 = inlined_call_operand.vmem [shape: f32[8,1], index: 8, kind: input, shape index: {}]   ;;  %s3712_s9 = inlined_call_operand.vmem [shape: f32[2,3,128], index: 9, kind: output, shape index: {}]  }
   0x1   :  { %s2937_s11 = smov 0  }
   0x2 LB: > { %s31_s12 = sadd.s32 1, %s2876_s10  ;;  %p2278_p0 = scmp.ge.s32.totalorder %s2880_s11, 1  ;;  %s2880_s11 = sphi %s2937_s11, %s19_s11   ;;  %s2876_s10 = sphi %s2935_s10, %s3714_s10   ;;  %s2872_s30 = sphi %s2933_s30, %s3713_s30  }
   0x3   : > { %p33_p1 = scmp.ge.s32.totalorder %s31_s12, 2  ;;  %p306_p2 = scmp.lt.s32.totalorder %s2880_s11, 3 }
   0x5   : > { %s3716_s12 = smov (%p33_p1, %s31_s12), 0  ;;  %p307_p3 = pnand %p2278_p0, %p306_p2 }
   0x6   : > { %v427_v0 = vld [vmem:[%s3705_s2 + $0x80] sm:$0xff] (!%p307_p3)  ;;  %p347_p4 = scmp.lt.s32.totalorder (!%p307_p3), %s2872_s30, 1  ;;  %v2882_v2 = vmov (!%p307_p3), 0   ;;  %v428_v3 = vld [vmem:[%s3705_s2 + $0x88] sm:$0xff] (!%p307_p3)  ;;  %v429_v5 = vld [vmem:[%s3705_s2 + $0x90] sm:$0xff] (!%p307_p3) }
   0x7   : > { %310 = sbr.rel (%p307_p3) target bundleno = 1215 (0x4bf), region = 56  ;;  %v411_v1 = vld [vmem:[%s3705_s2] sm:$0xff] (!%p307_p3)  ;;  %2735 = vset.pattern.permute.xlu1 (!%p307_p3), %v2882_v2  ;;  %2734 = vset.pattern.permute.xlu0 (!%p307_p3), %v2882_v2  ;;  %v412_v4 = vld [vmem:[%s3705_s2 + $0x8] sm:$0xff] (!%p307_p3)  ;;  %v430_v6 = vld [vmem:[%s3705_s2 + $0x98] sm:$0xff] (!%p307_p3) }
   0x8   : > { %525 = vperm.xlu0 (!%p307_p3), %2734, %v427_v0   ;;  %445 = vperm.xlu1 (!%p307_p3), %2735, %v411_v1   ;;  %v413_v9 = vld [vmem:[%s3705_s2 + $0x10] sm:$0xff] (!%p307_p3)  ;;  %v414_v10 = vld [vmem:[%s3705_s2 + $0x18] sm:$0xff] (!%p307_p3)  ;;  %v431_v12 = vld [vmem:[%s3705_s2 + $0xa0] sm:$0xff] (!%p307_p3) }
   0x9   : > { %v432_v13 = vld [vmem:[%s3705_s2 + $0xa8] sm:$0xff] (!%p307_p3)  ;;  %v2744_v15 = vld [vmem:[%s3704_s1] sm:$0xff] (!%p307_p3)   ;;  %v433_v20 = vld [vmem:[%s3705_s2 + $0xb0] sm:$0xff] (!%p307_p3) }
   0xa   : > { %v2745_v16 = vld [vmem:[%s3704_s1 + $0x40] sm:$0xff] (!%p307_p3)   ;;  %v416_v18 = vld [vmem:[%s3705_s2 + $0x28] sm:$0xff] (!%p307_p3)  ;;  %2661 = vmatprep.mubr.bf16.mxu0 (!%p307_p3), %v2744_v15  ;;  %v434_v21 = vld [vmem:[%s3705_s2 + $0xb8] sm:$0xff] (!%p307_p3) }
   0xb   : > { %v415_v17 = vld [vmem:[%s3705_s2 + $0x20] sm:$0xff] (!%p307_p3)  ;;  %2677 = vmatprep.mubr.bf16.mxu1 (!%p307_p3), %v2745_v16  ;;  %v417_v23 = vld [vmem:[%s3705_s2 + $0x30] sm:$0xff] (!%p307_p3)  ;;  %v418_v24 = vld [vmem:[%s3705_s2 + $0x38] sm:$0xff] (!%p307_p3) }
   0xc   : > { %530 = vperm.xlu0 (!%p307_p3), %2734, %v428_v3   ;;  %450 = vperm.xlu1 (!%p307_p3), %2735, %v412_v4   ;;  %v435_v26 = vld [vmem:[%s3705_s2 + $0xc0] sm:$0xff] (!%p307_p3)  ;;  %v436_v27 = vld [vmem:[%s3705_s2 + $0xc8] sm:$0xff] (!%p307_p3)  ;;  %v2748_v33 = vld [vmem:[%s3704_s1 + $0x10] sm:$0xff] (!%p307_p3)  }
   0xd   : > { %v419_v29 = vld [vmem:[%s3705_s2 + $0x40] sm:$0xff] (!%p307_p3)  ;;  %v420_v30 = vld [vmem:[%s3705_s2 + $0x48] sm:$0xff] (!%p307_p3)  ;;  %v2749_v34 = vld [vmem:[%s3704_s1 + $0x50] sm:$0xff] (!%p307_p3)  }
   0xe   : > { %s3718_s30 = smov (!%p347_p4, %s2872_s30), 1  ;;  %v2746_v31 = vld [vmem:[%s3704_s1 + $0x8] sm:$0xff]   ;;  %v437_v35 = vld [vmem:[%s3705_s2 + $0xd0] sm:$0xff]  ;;  %v438_v36 = vld [vmem:[%s3705_s2 + $0xd8] sm:$0xff] }
   0xf   : > { %s2374_s21 = sshll.u32 %s3718_s30, 6  ;;  %v2747_v32 = vld [vmem:[%s3704_s1 + $0x48] sm:$0xff]   ;;  %v421_v37 = vld [vmem:[%s3705_s2 + $0x50] sm:$0xff]  ;;  %v422_v38 = vld [vmem:[%s3705_s2 + $0x58] sm:$0xff]  ;;  %s2281_s17 = sshll.u32 %s3718_s30, 2 }
  0x10   : > { %s2969_s24 = scalar_lea.vmem %s3703_s0, %s2374_s21  ;;  %535 = vperm.xlu0 %2734, %v429_v5   ;;  %540 = vperm.xlu1 %2735, %v430_v6   ;;  %v2750_v39 = vld [vmem:[%s3704_s1 + $0x18] sm:$0xff]   ;;  %v2752_v41 = vld [vmem:[%s3704_s1 + $0x20] sm:$0xff]   ;;  %v440_v44 = vld [vmem:[%s3705_s2 + $0xe8] sm:$0xff]  ;;  %s361_s20 = scalar_lea.vmem %s3712_s9, %s2281_s17 }
  0x11   : > { %v2736_v7 = vld [vmem:[%s2969_s24] sm:$0xff]   ;;  %v2737_v8 = vld [vmem:[%s2969_s24 + $0x8] sm:$0xff]   ;;  %v2738_v11 = vld [vmem:[%s2969_s24 + $0x10] sm:$0xff]  }
  0x12   : > { %2645 = vmatprep.subr.bf16.mxu0 %v2736_v7  ;;  %2693 = vmatprep.subr.bf16.mxu1 %v2736_v7  ;;  %v2739_v14 = vld [vmem:[%s2969_s24 + $0x18] sm:$0xff]   ;;  %v2740_v19 = vld [vmem:[%s2969_s24 + $0x20] sm:$0xff]   ;;  %v2741_v22 = vld [vmem:[%s2969_s24 + $0x28] sm:$0xff]  }
  0x13   : > { %2646 = vmatpush3.bf16.msra.mxu0 %v2736_v7  ;;  %2701 = vmatpush3.bf16.msra.mxu1 %v2736_v7  ;;  %v2742_v25 = vld [vmem:[%s2969_s24 + $0x30] sm:$0xff]   ;;  %v2743_v28 = vld [vmem:[%s2969_s24 + $0x38] sm:$0xff]   ;;  %v2753_v42 = vld [vmem:[%s3704_s1 + $0x60] sm:$0xff]  }
  0x14   : > { %2647 = vmatprep.subr.bf16.mxu0 %v2737_v8  ;;  %2694 = vmatprep.subr.bf16.mxu1 %v2737_v8  ;;  %v2751_v40 = vld [vmem:[%s3704_s1 + $0x58] sm:$0xff]   ;;  %v439_v43 = vld [vmem:[%s3705_s2 + $0xe0] sm:$0xff]  ;;  %v424_v46 = vld [vmem:[%s3705_s2 + $0x68] sm:$0xff] }
  0x15   : > { %455 = vperm.xlu0 %2734, %v413_v9   ;;  %460 = vperm.xlu1 %2735, %v414_v10   ;;  %v423_v45 = vld [vmem:[%s3705_s2 + $0x60] sm:$0xff]  ;;  %v2754_v47 = vld [vmem:[%s3704_s1 + $0x28] sm:$0xff]   ;;  %v2756_v49 = vld [vmem:[%s3704_s1 + $0x30] sm:$0xff]  }
  0x16   : > { %v2755_v48 = vld [vmem:[%s3704_s1 + $0x68] sm:$0xff]   ;;  %v2757_v50 = vld [vmem:[%s3704_s1 + $0x70] sm:$0xff]   ;;  %v442_v52 = vld [vmem:[%s3705_s2 + $0xf8] sm:$0xff] }
  0x17   : > { %2648 = vmatpush3.bf16.msra.mxu0 %v2737_v8  ;;  %2702 = vmatpush3.bf16.msra.mxu1 %v2737_v8  ;;  %v441_v51 = vld [vmem:[%s3705_s2 + $0xf0] sm:$0xff]  ;;  %v426_v54 = vld [vmem:[%s3705_s2 + $0x78] sm:$0xff]  ;;  %v1004_v57 = vld [vmem:[%s3707_s4 + $0x80] sm:$0xff] }
  0x18   : > { %2649 = vmatprep.subr.bf16.mxu0 %v2738_v11  ;;  %2695 = vmatprep.subr.bf16.mxu1 %v2738_v11  ;;  %v425_v53 = vld [vmem:[%s3705_s2 + $0x70] sm:$0xff]  ;;  %v2758_v55 = vld [vmem:[%s3704_s1 + $0x38] sm:$0xff]   ;;  %v1005_v58 = vld [vmem:[%s3707_s4 + $0x88] sm:$0xff] }
  0x19   : > { %545 = vperm.xlu0 %2734, %v431_v12   ;;  %550 = vperm.xlu1 %2735, %v432_v13   ;;  %v2759_v56 = vld [vmem:[%s3704_s1 + $0x78] sm:$0xff]   ;;  %v988_v59 = vld [vmem:[%s3707_s4] sm:$0xff]  ;;  %v989_v60 = vld [vmem:[%s3707_s4 + $0x8] sm:$0xff] }
  0x1a   : > { %v1006_v61 = vld [vmem:[%s3707_s4 + $0x90] sm:$0xff]  ;;  %v1007_v62 = vld [vmem:[%s3707_s4 + $0x98] sm:$0xff]  ;;  %v1008_v1 = vld [vmem:[%s3707_s4 + $0xa0] sm:$0xff] }
  0x1b   : > { %2650 = vmatpush3.bf16.msra.mxu0 %v2738_v11  ;;  %2703 = vmatpush3.bf16.msra.mxu1 %v2738_v11  ;;  %v990_v63 = vld [vmem:[%s3707_s4 + $0x10] sm:$0xff]  ;;  %v991_v0 = vld [vmem:[%s3707_s4 + $0x18] sm:$0xff]  ;;  %v1009_v2 = vld [vmem:[%s3707_s4 + $0xa8] sm:$0xff] }
  0x1c   : > { %2651 = vmatprep.subr.bf16.mxu0 %v2739_v14  ;;  %2696 = vmatprep.subr.bf16.mxu1 %v2739_v14  ;;  %v992_v3 = vld [vmem:[%s3707_s4 + $0x20] sm:$0xff]  ;;  %v993_v4 = vld [vmem:[%s3707_s4 + $0x28] sm:$0xff]  ;;  %v1010_v5 = vld [vmem:[%s3707_s4 + $0xb0] sm:$0xff] }
  0x1d   : > { %465 = vperm.xlu0 %2734, %v415_v17   ;;  %470 = vperm.xlu1 %2735, %v416_v18   ;;  %v1011_v6 = vld [vmem:[%s3707_s4 + $0xb8] sm:$0xff]  ;;  %v994_v7 = vld [vmem:[%s3707_s4 + $0x30] sm:$0xff]  ;;  %v1012_v9 = vld [vmem:[%s3707_s4 + $0xc0] sm:$0xff] }
  0x1e   : > { %v995_v8 = vld [vmem:[%s3707_s4 + $0x38] sm:$0xff]  ;;  %v1013_v10 = vld [vmem:[%s3707_s4 + $0xc8] sm:$0xff]  ;;  %v996_v11 = vld [vmem:[%s3707_s4 + $0x40] sm:$0xff] }
  0x1f   : > { %2652 = vmatpush3.bf16.msra.mxu0 %v2739_v14  ;;  %2704 = vmatpush3.bf16.msra.mxu1 %v2739_v14  ;;  %v997_v12 = vld [vmem:[%s3707_s4 + $0x48] sm:$0xff]  ;;  %v1014_v13 = vld [vmem:[%s3707_s4 + $0xd0] sm:$0xff]  ;;  %v1015_v14 = vld [vmem:[%s3707_s4 + $0xd8] sm:$0xff] }
  0x20   : > { %2653 = vmatprep.subr.bf16.mxu0 %v2740_v19  ;;  %2697 = vmatprep.subr.bf16.mxu1 %v2740_v19  ;;  %v998_v15 = vld [vmem:[%s3707_s4 + $0x50] sm:$0xff]  ;;  %v999_v16 = vld [vmem:[%s3707_s4 + $0x58] sm:$0xff]  ;;  %v1016_v17 = vld [vmem:[%s3707_s4 + $0xe0] sm:$0xff] }
  0x21   : > { %555 = vperm.xlu0 %2734, %v433_v20   ;;  %560 = vperm.xlu1 %2735, %v434_v21   ;;  %v1017_v18 = vld [vmem:[%s3707_s4 + $0xe8] sm:$0xff]  ;;  %v1018_v21 = vld [vmem:[%s3707_s4 + $0xf0] sm:$0xff] }
  0x22   : > { %v1001_v20 = vld [vmem:[%s3707_s4 + $0x68] sm:$0xff] }
  0x23   : > { %2654 = vmatpush3.bf16.msra.mxu0 %v2740_v19  ;;  %2705 = vmatpush3.bf16.msra.mxu1 %v2740_v19  ;;  %v1000_v19 = vld [vmem:[%s3707_s4 + $0x60] sm:$0xff] }
  0x24   : > { %2655 = vmatprep.subr.bf16.mxu0 %v2741_v22  ;;  %2698 = vmatprep.subr.bf16.mxu1 %v2741_v22 }
  0x25   : > { %475 = vperm.xlu0 %2734, %v417_v23   ;;  %480 = vperm.xlu1 %2735, %v418_v24   ;;  %v1002_v23 = vld [vmem:[%s3707_s4 + $0x70] sm:$0xff]  ;;  %v1003_v24 = vld [vmem:[%s3707_s4 + $0x78] sm:$0xff] }
  0x27   : > { %2656 = vmatpush3.bf16.msra.mxu0 %v2741_v22  ;;  %2706 = vmatpush3.bf16.msra.mxu1 %v2741_v22  ;;  %v1019_v22 = vld [vmem:[%s3707_s4 + $0xf8] sm:$0xff] }
  0x28   : > { %2657 = vmatprep.subr.bf16.mxu0 %v2742_v25  ;;  %2699 = vmatprep.subr.bf16.mxu1 %v2742_v25 }
  0x29   : > { %565 = vperm.xlu0 %2734, %v435_v26   ;;  %570 = vperm.xlu1 %2735, %v436_v27   ;;  %v1598_v26 = vld [vmem:[%s3709_s6 + $0x88] sm:$0xff]  ;;  %v1581_v27 = vld [vmem:[%s3709_s6] sm:$0xff] }
  0x2b   : > { %2658 = vmatpush3.bf16.msra.mxu0 %v2742_v25  ;;  %2707 = vmatpush3.bf16.msra.mxu1 %v2742_v25  ;;  %v1597_v25 = vld [vmem:[%s3709_s6 + $0x80] sm:$0xff] }
  0x2c   : > { %2659 = vmatprep.subr.bf16.mxu0 %v2743_v28  ;;  %2700 = vmatprep.subr.bf16.mxu1 %v2743_v28 }
  0x2d   : > { %485 = vperm.xlu0 %2734, %v419_v29   ;;  %490 = vperm.xlu1 %2735, %v420_v30   ;;  %v1599_v29 = vld [vmem:[%s3709_s6 + $0x90] sm:$0xff]  ;;  %v1600_v30 = vld [vmem:[%s3709_s6 + $0x98] sm:$0xff] }
  0x2f   : > { %2660 = vmatpush3.bf16.msra.mxu0 %v2743_v28  ;;  %2708 = vmatpush3.bf16.msra.mxu1 %v2743_v28  ;;  %v1582_v28 = vld [vmem:[%s3709_s6 + $0x8] sm:$0xff] }
  0x31   : > { %575 = vperm.xlu0 %2734, %v437_v35   ;;  %580 = vperm.xlu1 %2735, %v438_v36   ;;  %v1585_v35 = vld [vmem:[%s3709_s6 + $0x20] sm:$0xff]  ;;  %v1586_v36 = vld [vmem:[%s3709_s6 + $0x28] sm:$0xff] }
  0x32   : > { %2662 = vmatmul.mubr.bf16.vlgmr.msra.gmra.mrb[0].mxu0 %v2746_v31  ;;  %2678 = vmatmul.mubr.bf16.vlgmr.msra.gmra.mrb[0].mxu1 %v2747_v32  ;;  %v1583_v31 = vld [vmem:[%s3709_s6 + $0x10] sm:$0xff]  ;;  %v1584_v32 = vld [vmem:[%s3709_s6 + $0x18] sm:$0xff] }
  0x33   : > { %2665 = vmatprep.mubr.bf16.mxu0 %v2748_v33  ;;  %2681 = vmatprep.mubr.bf16.mxu1 %v2749_v34  ;;  %v1601_v33 = vld [vmem:[%s3709_s6 + $0xa0] sm:$0xff]  ;;  %v1602_v34 = vld [vmem:[%s3709_s6 + $0xa8] sm:$0xff] }
  0x35   : > { %495 = vperm.xlu0 %2734, %v421_v37   ;;  %500 = vperm.xlu1 %2735, %v422_v38   ;;  %v1603_v37 = vld [vmem:[%s3709_s6 + $0xb0] sm:$0xff]  ;;  %v1604_v38 = vld [vmem:[%s3709_s6 + $0xb8] sm:$0xff] }
  0x39   : > { %585 = vperm.xlu0 %2734, %v439_v43   ;;  %590 = vperm.xlu1 %2735, %v440_v44   ;;  %v1589_v43 = vld [vmem:[%s3709_s6 + $0x40] sm:$0xff]  ;;  %v1590_v44 = vld [vmem:[%s3709_s6 + $0x48] sm:$0xff] }
  0x3a   : > { %2666 = vmatmul.mubr.bf16.gmra.mrb[4].mxu0 %v2750_v39  ;;  %2682 = vmatmul.mubr.bf16.gmra.mrb[4].mxu1 %v2751_v40  ;;  %v1587_v39 = vld [vmem:[%s3709_s6 + $0x30] sm:$0xff]  ;;  %v1588_v40 = vld [vmem:[%s3709_s6 + $0x38] sm:$0xff] }
  0x3b   : > { %2669 = vmatprep.mubr.bf16.mxu0 %v2752_v41  ;;  %2685 = vmatprep.mubr.bf16.mxu1 %v2753_v42  ;;  %v1605_v41 = vld [vmem:[%s3709_s6 + $0xc0] sm:$0xff]  ;;  %v1606_v42 = vld [vmem:[%s3709_s6 + $0xc8] sm:$0xff] }
  0x3d   : > { %505 = vperm.xlu0 %2734, %v423_v45   ;;  %510 = vperm.xlu1 %2735, %v424_v46   ;;  %v2762_v45 = vld [vmem:[%s3706_s3 + $0x4] ss:$8 sps:$4 sm:$0xff]   ;;  %v1607_v46 = vld [vmem:[%s3709_s6 + $0xd0] sm:$0xff] }
  0x41   : > { %595 = vperm.xlu0 %2734, %v441_v51   ;;  %600 = vperm.xlu1 %2735, %v442_v52   ;;  %v1610_v51 = vld [vmem:[%s3709_s6 + $0xe8] sm:$0xff] }
  0x42   : > { %2670 = vmatmul.mubr.bf16.gmra.mrb[8].mxu0 %v2754_v47  ;;  %2686 = vmatmul.mubr.bf16.gmra.mrb[8].mxu1 %v2755_v48  ;;  %v1608_v47 = vld [vmem:[%s3709_s6 + $0xd8] sm:$0xff]  ;;  %v1591_v48 = vld [vmem:[%s3709_s6 + $0x50] sm:$0xff] }
  0x43   : > { %2673 = vmatprep.mubr.bf16.mxu0 %v2756_v49  ;;  %2689 = vmatprep.mubr.bf16.mxu1 %v2757_v50  ;;  %v1592_v49 = vld [vmem:[%s3709_s6 + $0x58] sm:$0xff]  ;;  %v1609_v50 = vld [vmem:[%s3709_s6 + $0xe0] sm:$0xff] }
  0x45   : > { %515 = vperm.xlu0 %2734, %v425_v53   ;;  %520 = vperm.xlu1 %2735, %v426_v54   ;;  %v1593_v53 = vld [vmem:[%s3709_s6 + $0x60] sm:$0xff]  ;;  %v1594_v54 = vld [vmem:[%s3709_s6 + $0x68] sm:$0xff] }
  0x49   : > { %1102 = vperm.xlu0 %2734, %v1004_v57   ;;  %1107 = vperm.xlu1 %2735, %v1005_v58   ;;  %v1612_v57 = vld [vmem:[%s3709_s6 + $0xf8] sm:$0xff] }
  0x4a   : > { %2674 = vmatmul.mubr.bf16.gmra.mrb[12].mxu0 %v2758_v55  ;;  %2690 = vmatmul.mubr.bf16.gmra.mrb[12].mxu1 %v2759_v56  ;;  %v1611_v56 = vld [vmem:[%s3709_s6 + $0xf0] sm:$0xff] }
  0x4b   : > { %1372 = vmatprep.mubr.bf16.mxu1 %v2762_v45 }
  0x4d   : > { %1022 = vperm.xlu0 %2734, %v988_v59   ;;  %1027 = vperm.xlu1 %2735, %v989_v60   ;;  %v1595_v60 = vld [vmem:[%s3709_s6 + $0x70] sm:$0xff] }
  0x51   : > { %1112 = vperm.xlu0 %2734, %v1006_v61   ;;  %1117 = vperm.xlu1 %2735, %v1007_v62   ;;  %v1596_v61 = vld [vmem:[%s3709_s6 + $0x78] sm:$0xff] }
  0x55   : > { %1032 = vperm.xlu0 %2734, %v990_v63   ;;  %1037 = vperm.xlu1 %2735, %v991_v0   ;;  %v2143_v63 = vld [vmem:[%s3711_s8] sm:$0xff] }
  0x59   : > { %1122 = vperm.xlu0 %2734, %v1008_v1   ;;  %1127 = vperm.xlu1 %2735, %v1009_v2  }
  0x5d   : > { %1042 = vperm.xlu0 %2734, %v992_v3   ;;  %1047 = vperm.xlu1 %2735, %v993_v4  }
  0x61   : > { %1132 = vperm.xlu0 %2734, %v1010_v5   ;;  %1137 = vperm.xlu1 %2735, %v1011_v6  }
  0x65   : > { %1052 = vperm.xlu0 %2734, %v994_v7   ;;  %1057 = vperm.xlu1 %2735, %v995_v8  }
  0x69   : > { %1142 = vperm.xlu0 %2734, %v1012_v9   ;;  %1147 = vperm.xlu1 %2735, %v1013_v10  }
  0x6d   : > { %1062 = vperm.xlu0 %2734, %v996_v11   ;;  %1067 = vperm.xlu1 %2735, %v997_v12  }
  0x71   : > { %1152 = vperm.xlu0 %2734, %v1014_v13   ;;  %1157 = vperm.xlu1 %2735, %v1015_v14  }
  0x75   : > { %1072 = vperm.xlu0 %2734, %v998_v15   ;;  %1077 = vperm.xlu1 %2735, %v999_v16  }
  0x79   : > { %1162 = vperm.xlu0 %2734, %v1016_v17   ;;  %1167 = vperm.xlu1 %2735, %v1017_v18  }
  0x7d   : > { %1082 = vperm.xlu0 %2734, %v1000_v19   ;;  %1087 = vperm.xlu1 %2735, %v1001_v20  }
  0x81   : > { %1172 = vperm.xlu0 %2734, %v1018_v21   ;;  %1177 = vperm.xlu1 %2735, %v1019_v22  }
  0x85   : > { %1092 = vperm.xlu0 %2734, %v1002_v23   ;;  %1097 = vperm.xlu1 %2735, %v1003_v24  }
  0x87   : > { %v526_v52 = vpop.permute.xlu0 %525  ;;  %v446_v55 = vpop.permute.xlu1 %445 }
  0x89   : > { %1695 = vperm.xlu0 %2734, %v1597_v25   ;;  %1700 = vperm.xlu1 %2735, %v1598_v26  }
  0x8b   : > { %v531_v58 = vpop.permute.xlu0 %530  ;;  %v451_v59 = vpop.permute.xlu1 %450 }
  0x8d   : > { %1615 = vperm.xlu0 %2734, %v1581_v27   ;;  %1620 = vperm.xlu1 %2735, %v1582_v28  }
  0x8f   : > { %v536_v62 = vpop.permute.xlu0 %535  ;;  %v541_v0 = vpop.permute.xlu1 %540 }
  0x91   : > { %1705 = vperm.xlu0 %2734, %v1599_v29   ;;  %1710 = vperm.xlu1 %2735, %v1600_v30  }
  0x94   : > { %v456_v1 = vpop.permute.xlu0 %455  ;;  %v461_v2 = vpop.permute.xlu1 %460 }
  0x95   : > { %1625 = vperm.xlu0 %2734, %v1583_v31   ;;  %1630 = vperm.xlu1 %2735, %v1584_v32  }
  0x98   : > { %v546_v3 = vpop.permute.xlu0 %545  ;;  %v3309_v4 = vpop.permute.xlu1 %550 }
  0x99   : > { %1715 = vperm.xlu0 %2734, %v1601_v33   ;;  %1720 = vperm.xlu1 %2735, %v1602_v34  }
  0x9c   : > { %v466_v5 = vpop.permute.xlu0 %465  ;;  %v471_v6 = vpop.permute.xlu1 %470 }
  0x9d   : > { %1635 = vperm.xlu0 %2734, %v1585_v35   ;;  %1640 = vperm.xlu1 %2735, %v1586_v36  }
  0xa0   : > { %v556_v7 = vpop.permute.xlu0 %555  ;;  %v561_v8 = vpop.permute.xlu1 %560 }
  0xa1   : > { %1725 = vperm.xlu0 %2734, %v1603_v37   ;;  %1730 = vperm.xlu1 %2735, %v1604_v38  }
  0xa4   : > { %v476_v9 = vpop.permute.xlu0 %475  ;;  %v481_v10 = vpop.permute.xlu1 %480 }
  0xa5   : > { %1645 = vperm.xlu0 %2734, %v1587_v39   ;;  %1650 = vperm.xlu1 %2735, %v1588_v40  }
  0xa8   : > { %v3311_v11 = vpop.permute.xlu0 %565  ;;  %v3313_v12 = vpop.permute.xlu1 %570 }
  0xa9   : > { %1735 = vperm.xlu0 %2734, %v1605_v41   ;;  %1740 = vperm.xlu1 %2735, %v1606_v42  }
  0xac   : > { %v3315_v13 = vpop.permute.xlu0 %485  ;;  %v3317_v14 = vpop.permute.xlu1 %490 }
  0xad   : > { %1655 = vperm.xlu0 %2734, %v1589_v43   ;;  %1660 = vperm.xlu1 %2735, %v1590_v44  }
  0xb0   : > { %v3319_v15 = vpop.permute.xlu0 %575  ;;  %v3321_v16 = vpop.permute.xlu1 %580 }
  0xb1   : > { %1745 = vperm.xlu0 %2734, %v1607_v46   ;;  %1750 = vperm.xlu1 %2735, %v1608_v47  }
  0xb4   : > { %v3323_v17 = vpop.permute.xlu0 %495  ;;  %v3325_v18 = vpop.permute.xlu1 %500 }
  0xb5   : > { %1665 = vperm.xlu0 %2734, %v1591_v48   ;;  %1670 = vperm.xlu1 %2735, %v1592_v49  }
  0xb8   : > { %v3327_v19 = vpop.permute.xlu0 %585  ;;  %v3329_v24 = vpop.permute.xlu1 %590 }
  0xb9   : > { %1755 = vperm.xlu0 %2734, %v1609_v50   ;;  %1760 = vperm.xlu1 %2735, %v1610_v51  }
  0xbc   : > { %v3331_v41 = vpop.permute.xlu0 %505 }
  0xbd   : > { %1675 = vperm.xlu0 %2734, %v1593_v53   ;;  %1680 = vperm.xlu1 %2735, %v1594_v54   ;;  %v3333_v54 = vpop.permute.xlu1 %510 }
  0xc1   : > { %1765 = vperm.xlu0 %2734, %v1611_v56   ;;  %1770 = vperm.xlu1 %2735, %v1612_v57  }
  0xc5   : > { %1685 = vperm.xlu0 %2734, %v1595_v60   ;;  %1690 = vperm.xlu1 %2735, %v1596_v61  }
  0xc9   : > { %2146 = vperm.xlu0 %2734, %v2143_v63  }
 0x105   : > { %v2663_v20 = vpop.f32.mrb[0].mxu0  ;;  %v2679_v21 = vpop.f32.mrb[0].mxu1 }
 0x106   : > { %v781_v22 = vpop.f32.mrb[1].mxu0  ;;  %v845_v23 = vpop.f32.mrb[1].mxu1  ;;  %v790_v25 = vadd.f32 %v2663_v20, %v456_v1  ;;  %v854_v26 = vadd.f32 %v2679_v21, %v536_v62 }
 0x107   : > { %v782_v27 = vadd.f32 %v781_v22, %v446_v55  ;;  %v846_v28 = vadd.f32 %v845_v23, %v526_v52  ;;  %v2664_v29 = vpop.f32.mrb[2].mxu0  ;;  %v2680_v30 = vpop.f32.mrb[2].mxu1 }
 0x108   : > { %v793_v31 = vadd.f32 %v2664_v29, %v461_v2  ;;  %v857_v32 = vadd.f32 %v2680_v30, %v541_v0  ;;  %v784_v33 = vpop.f32.mrb[3].mxu0  ;;  %v848_v34 = vpop.f32.mrb[3].mxu1  ;;  %v910_v37 = vmax.f32 %v790_v25, 0.0  ;;  %v926_v38 = vmax.f32 %v854_v26, 0.0 }
 0x109   : > { %v785_v35 = vadd.f32 %v784_v33, %v451_v59  ;;  %v849_v36 = vadd.f32 %v848_v34, %v531_v58  ;;  %v908_v42 = vmax.f32 %v782_v27, 0.0  ;;  %v924_v43 = vmax.f32 %v846_v28, 0.0 }
 0x10a   : > { %v911_v39 = vmax.f32 %v793_v31, 0.0  ;;  %v927_v40 = vmax.f32 %v857_v32, 0.0 }
 0x10b   : > { %v909_v44 = vmax.f32 %v785_v35, 0.0  ;;  %v925_v45 = vmax.f32 %v849_v36, 0.0 }
 0x10c   : > { %v941_v46 = vpack.c.bf16 %v911_v39, %v910_v37  ;;  %v949_v47 = vpack.c.bf16 %v927_v40, %v926_v38 }
 0x10d   : > { %v2667_v48 = vpop.f32.mrb[4].mxu0  ;;  %v2683_v49 = vpop.f32.mrb[4].mxu1  ;;  %v940_v50 = vpack.c.bf16 %v909_v44, %v908_v42  ;;  %v948_v51 = vpack.c.bf16 %v925_v45, %v924_v43 }
 0x10e   : > { %v797_v52 = vpop.f32.mrb[5].mxu0  ;;  %v861_v53 = vpop.f32.mrb[5].mxu1  ;;  %v806_v55 = vadd.f32 %v2667_v48, %v476_v9  ;;  %v870_v56 = vadd.f32 %v2683_v49, %v556_v7 }
 0x10f   : > { %v798_v57 = vadd.f32 %v797_v52, %v466_v5  ;;  %v862_v58 = vadd.f32 %v861_v53, %v546_v3  ;;  %v2668_v59 = vpop.f32.mrb[6].mxu0  ;;  %v2684_v60 = vpop.f32.mrb[6].mxu1  ;;  %2399 = vmatprep.subr.bf16.mxu1 %v948_v51 }
 0x110   : > { %v809_v61 = vadd.f32 %v2668_v59, %v481_v10  ;;  %v873_v62 = vadd.f32 %v2684_v60, %v561_v8  ;;  %v800_v63 = vpop.f32.mrb[7].mxu0  ;;  %v864_v0 = vpop.f32.mrb[7].mxu1  ;;  %2400 = vmatpush3.bf16.msra.mxu1 %v940_v50  ;;  %v914_v20 = vmax.f32 %v806_v55, 0.0  ;;  %v930_v21 = vmax.f32 %v870_v56, 0.0 }
 0x111   : > { %v801_v1 = vadd.f32 %v800_v63, %v471_v6  ;;  %v865_v2 = vadd.f32 %v864_v0, %v3309_v4  ;;  %2401 = vmatprep.subr.bf16.mxu1 %v949_v47  ;;  %v596_v9 = vpop.permute.xlu0 %595  ;;  %v912_v7 = vmax.f32 %v798_v57, 0.0  ;;  %v928_v5 = vmax.f32 %v862_v58, 0.0  ;;  %v601_v4 = vpop.permute.xlu1 %600 }
 0x112   : > { %v915_v22 = vmax.f32 %v809_v61, 0.0  ;;  %v931_v23 = vmax.f32 %v873_v62, 0.0 }
 0x113   : > { %v913_v3 = vmax.f32 %v801_v1, 0.0  ;;  %v929_v25 = vmax.f32 %v865_v2, 0.0 }
 0x114   : > { %v943_v26 = vpack.c.bf16 %v915_v22, %v914_v20  ;;  %v951_v27 = vpack.c.bf16 %v931_v23, %v930_v21  ;;  %2402 = vmatpush3.bf16.msra.mxu1 %v941_v46 }
 0x115   : > { %v2671_v8 = vpop.f32.mrb[8].mxu0  ;;  %v2687_v10 = vpop.f32.mrb[8].mxu1  ;;  %v942_v28 = vpack.c.bf16 %v913_v3, %v912_v7  ;;  %v950_v29 = vpack.c.bf16 %v929_v25, %v928_v5 }
 0x116   : > { %v813_v6 = vpop.f32.mrb[9].mxu0  ;;  %v877_v30 = vpop.f32.mrb[9].mxu1  ;;  %v822_v31 = vadd.f32 %v2671_v8, %v3323_v17  ;;  %v886_v32 = vadd.f32 %v2687_v10, %v3319_v15  ;;  %v2766_v8 = vld [vmem:[%s3706_s3 + $0x24] ss:$8 sps:$4 sm:$0xff]   ;;  %v2768_v10 = vld [vmem:[%s3706_s3 + $0x20] ss:$8 sps:$4 sm:$0xff]  }
 0x117   : > { %v814_v33 = vadd.f32 %v813_v6, %v3315_v13  ;;  %v878_v34 = vadd.f32 %v877_v30, %v3311_v11  ;;  %v2672_v35 = vpop.f32.mrb[10].mxu0  ;;  %v2688_v36 = vpop.f32.mrb[10].mxu1  ;;  %2403 = vmatprep.subr.bf16.mxu1 %v950_v29  ;;  %v2771_v29 = vld [vmem:[%s3706_s3 + $0x30] ss:$8 sps:$4 sm:$0xff]   ;;  %v2772_v6 = vld [vmem:[%s3706_s3 + $0x44] ss:$8 sps:$4 sm:$0xff]  }
 0x118   : > { %v825_v37 = vadd.f32 %v2672_v35, %v3325_v18  ;;  %v889_v38 = vadd.f32 %v2688_v36, %v3321_v16  ;;  %v816_v39 = vpop.f32.mrb[11].mxu0  ;;  %v880_v40 = vpop.f32.mrb[11].mxu1  ;;  %2404 = vmatpush3.bf16.msra.mxu1 %v942_v28  ;;  %v918_v15 = vmax.f32 %v822_v31, 0.0  ;;  %v934_v43 = vmax.f32 %v886_v32, 0.0  ;;  %v2769_v28 = vld [vmem:[%s3706_s3 + $0x34] ss:$8 sps:$4 sm:$0xff]  }
 0x119   : > { %v817_v42 = vadd.f32 %v816_v39, %v3317_v14  ;;  %v881_v17 = vadd.f32 %v880_v40, %v3313_v12  ;;  %2405 = vmatprep.subr.bf16.mxu1 %v951_v27  ;;  %v516_v11 = vpop.permute.xlu0 %515  ;;  %v916_v45 = vmax.f32 %v814_v33, 0.0  ;;  %v932_v46 = vmax.f32 %v878_v34, 0.0  ;;  %v521_v12 = vpop.permute.xlu1 %520  ;;  %v2765_v27 = vld [vmem:[%s3706_s3 + $0x10] ss:$8 sps:$4 sm:$0xff]   ;;  %v2774_v30 = vld [vmem:[%s3706_s3 + $0x40] ss:$8 sps:$4 sm:$0xff]  }
 0x11a   : > { %v919_v13 = vmax.f32 %v825_v37, 0.0  ;;  %v935_v44 = vmax.f32 %v889_v38, 0.0  ;;  %v2777_v31 = vld [vmem:[%s3706_s3 + $0x50] ss:$8 sps:$4 sm:$0xff]   ;;  %v2778_v32 = vld [vmem:[%s3706_s3 + $0x64] ss:$8 sps:$4 sm:$0xff]  }
 0x11b   : > { %v917_v47 = vmax.f32 %v817_v42, 0.0  ;;  %v933_v48 = vmax.f32 %v881_v17, 0.0  ;;  %v2780_v33 = vld [vmem:[%s3706_s3 + $0x60] ss:$8 sps:$4 sm:$0xff]   ;;  %v2781_v34 = vld [vmem:[%s3706_s3 + $0x74] ss:$8 sps:$4 sm:$0xff]  }
 0x11c   : > { %v945_v18 = vpack.c.bf16 %v919_v13, %v918_v15  ;;  %v953_v49 = vpack.c.bf16 %v935_v44, %v934_v43  ;;  %2406 = vmatpush3.bf16.msra.mxu1 %v943_v26  ;;  %v2783_v35 = vld [vmem:[%s3706_s3 + $0x70] ss:$8 sps:$4 sm:$0xff]   ;;  %v2784_v36 = vld [vmem:[%s3706_s3 + $0x84] ss:$8 sps:$4 sm:$0xff]   ;;  %v2786_v37 = vld [vmem:[%s3706_s3 + $0x80] ss:$8 sps:$4 sm:$0xff]  }
 0x11d   : > { %v2675_v16 = vpop.f32.mrb[12].mxu0  ;;  %v2691_v50 = vpop.f32.mrb[12].mxu1  ;;  %v944_v51 = vpack.c.bf16 %v917_v47, %v916_v45  ;;  %v952_v52 = vpack.c.bf16 %v933_v48, %v932_v46  ;;  %v2787_v38 = vld [vmem:[%s3706_s3 + $0x94] ss:$8 sps:$4 sm:$0xff]   ;;  %v2789_v39 = vld [vmem:[%s3706_s3 + $0x90] ss:$8 sps:$4 sm:$0xff]  }
 0x11e   : > { %v829_v14 = vpop.f32.mrb[13].mxu0  ;;  %v893_v53 = vpop.f32.mrb[13].mxu1  ;;  %v838_v55 = vadd.f32 %v2675_v16, %v516_v11  ;;  %v902_v56 = vadd.f32 %v2691_v50, %v596_v9  ;;  %v2790_v40 = vld [vmem:[%s3706_s3 + $0xa4] ss:$8 sps:$4 sm:$0xff]   ;;  %v2792_v42 = vld [vmem:[%s3706_s3 + $0xa0] ss:$8 sps:$4 sm:$0xff]  }
 0x11f   : > { %v830_v57 = vadd.f32 %v829_v14, %v3331_v41  ;;  %v894_v58 = vadd.f32 %v893_v53, %v3327_v19  ;;  %v2676_v59 = vpop.f32.mrb[14].mxu0  ;;  %v2692_v60 = vpop.f32.mrb[14].mxu1  ;;  %2407 = vmatprep.subr.bf16.mxu1 %v952_v52  ;;  %v2793_v17 = vld [vmem:[%s3706_s3 + $0xb4] ss:$8 sps:$4 sm:$0xff]   ;;  %v2795_v15 = vld [vmem:[%s3706_s3 + $0xb0] ss:$8 sps:$4 sm:$0xff]  }
 0x120   : > { %v841_v61 = vadd.f32 %v2676_v59, %v521_v12  ;;  %v905_v62 = vadd.f32 %v2692_v60, %v601_v4  ;;  %v832_v63 = vpop.f32.mrb[15].mxu0  ;;  %v896_v0 = vpop.f32.mrb[15].mxu1  ;;  %2408 = vmatpush3.bf16.msra.mxu1 %v944_v51  ;;  %v922_v20 = vmax.f32 %v838_v55, 0.0  ;;  %v938_v21 = vmax.f32 %v902_v56, 0.0  ;;  %v2775_v4 = vld [vmem:[%s3706_s3 + $0x54] ss:$8 sps:$4 sm:$0xff]  }
 0x121   : > { %v833_v1 = vadd.f32 %v832_v63, %v3333_v54  ;;  %v897_v2 = vadd.f32 %v896_v0, %v3329_v24  ;;  %2409 = vmatprep.subr.bf16.mxu1 %v953_v49  ;;  %v920_v41 = vmax.f32 %v830_v57, 0.0  ;;  %v936_v9 = vmax.f32 %v894_v58, 0.0  ;;  %v2760_v24 = vld [vmem:[%s3706_s3] ss:$8 sps:$4 sm:$0xff]   ;;  %v2763_v54 = vld [vmem:[%s3706_s3 + $0x14] ss:$8 sps:$4 sm:$0xff]   ;;  %v3443_v49 = vpop.permute.xlu1 %1107 }
 0x122   : > { %v923_v22 = vmax.f32 %v841_v61, 0.0  ;;  %v939_v23 = vmax.f32 %v905_v62, 0.0  ;;  %v2796_v43 = vld [vmem:[%s3706_s3 + $0xc4] ss:$8 sps:$4 sm:$0xff]   ;;  %v2798_v13 = vld [vmem:[%s3706_s3 + $0xc0] ss:$8 sps:$4 sm:$0xff]  }
 0x123   : > { %v921_v19 = vmax.f32 %v833_v1, 0.0  ;;  %v937_v7 = vmax.f32 %v897_v2, 0.0  ;;  %v2799_v44 = vld [vmem:[%s3706_s3 + $0xd4] ss:$8 sps:$4 sm:$0xff]   ;;  %v2801_v11 = vld [vmem:[%s3706_s3 + $0xd0] ss:$8 sps:$4 sm:$0xff]  }
 0x124   : > { %v947_v5 = vpack.c.bf16 %v923_v22, %v922_v20  ;;  %v955_v3 = vpack.c.bf16 %v939_v23, %v938_v21  ;;  %2410 = vmatpush3.bf16.msra.mxu1 %v945_v18  ;;  %v2802_v45 = vld [vmem:[%s3706_s3 + $0xe4] ss:$8 sps:$4 sm:$0xff]   ;;  %v2804_v46 = vld [vmem:[%s3706_s3 + $0xe0] ss:$8 sps:$4 sm:$0xff]   ;;  %v2805_v47 = vld [vmem:[%s3706_s3 + $0xf4] ss:$8 sps:$4 sm:$0xff]   ;;  %v3441_v18 = vpop.permute.xlu0 %1102 }
 0x125   : > { %v946_v25 = vpack.c.bf16 %v921_v19, %v920_v41  ;;  %v954_v26 = vpack.c.bf16 %v937_v7, %v936_v9  ;;  %v2807_v48 = vld [vmem:[%s3706_s3 + $0xf0] ss:$8 sps:$4 sm:$0xff]   ;;  %v1028_v50 = vpop.permute.xlu1 %1027  ;;  %v2810_v2 = vld [vmem:[%s3708_s5 + $0x4] ss:$8 sps:$4 sm:$0xff]  }
 0x126   : > { %1965 = vmatprep.mubr.bf16.mxu0 %v2810_v2 }
 0x127   : > { %2411 = vmatprep.subr.bf16.mxu1 %v954_v26 }
 0x128   : > { %2412 = vmatpush3.bf16.msra.mxu1 %v946_v25  ;;  %v1023_v16 = vpop.permute.xlu0 %1022 }
 0x129   : > { %2413 = vmatprep.subr.bf16.mxu1 %v955_v3  ;;  %v3447_v52 = vpop.permute.xlu1 %1117 }
 0x12c   : > { %2414 = vmatpush3.bf16.msra.mxu1 %v947_v5  ;;  %v3445_v51 = vpop.permute.xlu0 %1112 }
 0x12d   : > { %v1038_v53 = vpop.permute.xlu1 %1037 }
 0x12f   : > { %1373 = vmatmul.mubr.bf16.vlgmr.msra.gmra.mrb[16].mxu1 %v2760_v24 }
 0x130   : > { %1380 = vmatprep.mubr.bf16.mxu1 %v2763_v54  ;;  %v1033_v14 = vpop.permute.xlu0 %1032 }
 0x131   : > { %v3451_v55 = vpop.permute.xlu1 %1127 }
 0x134   : > { %v3449_v12 = vpop.permute.xlu0 %1122 }
 0x135   : > { %v1048_v58 = vpop.permute.xlu1 %1047 }
 0x137   : > { %1381 = vmatmul.mubr.bf16.gmra.mrb[20].mxu1 %v2765_v27 }
 0x138   : > { %1388 = vmatprep.mubr.bf16.mxu1 %v2766_v8  ;;  %v1043_v56 = vpop.permute.xlu0 %1042 }
 0x139   : > { %v3458_v21 = vpop.permute.xlu1 %1137 }
 0x13c   : > { %v3453_v1 = vpop.permute.xlu0 %1132 }
 0x13d   : > { %v1058_v54 = vpop.permute.xlu1 %1057 }
 0x13f   : > { %1389 = vmatmul.mubr.bf16.gmra.mrb[24].mxu1 %v2768_v10 }
 0x140   : > { %1396 = vmatprep.mubr.bf16.mxu1 %v2769_v28  ;;  %v1053_v3 = vpop.permute.xlu0 %1052 }
 0x147   : > { %1397 = vmatmul.mubr.bf16.gmra.mrb[28].mxu1 %v2771_v29  ;;  %v3462_v29 = vpop.permute.xlu0 %1142 }
 0x148   : > { %1404 = vmatprep.mubr.bf16.mxu1 %v2772_v6 }
 0x14f   : > { %1405 = vmatmul.mubr.bf16.gmra.mrb[32].mxu1 %v2774_v30 }
 0x150   : > { %1412 = vmatprep.mubr.bf16.mxu1 %v2775_v4 }
 0x157   : > { %1413 = vmatmul.mubr.bf16.gmra.mrb[36].mxu1 %v2777_v31 }
 0x158   : > { %1420 = vmatprep.mubr.bf16.mxu1 %v2778_v32  ;;  %v3466_v32 = vpop.permute.xlu1 %1147 }
 0x15f   : > { %1421 = vmatmul.mubr.bf16.gmra.mrb[40].mxu1 %v2780_v33 }
 0x160   : > { %1428 = vmatprep.mubr.bf16.mxu1 %v2781_v34 }
 0x167   : > { %1429 = vmatmul.mubr.bf16.gmra.mrb[44].mxu1 %v2783_v35 }
 0x168   : > { %1436 = vmatprep.mubr.bf16.mxu1 %v2784_v36 }
 0x16f   : > { %1437 = vmatmul.mubr.bf16.gmra.mrb[48].mxu1 %v2786_v37  ;;  %v1063_v37 = vpop.permute.xlu0 %1062 }
 0x170   : > { %1444 = vmatprep.mubr.bf16.mxu1 %v2787_v38 }
 0x177   : > { %1445 = vmatmul.mubr.bf16.gmra.mrb[52].mxu1 %v2789_v39 }
 0x178   : > { %1452 = vmatprep.mubr.bf16.mxu1 %v2790_v40 }
 0x17f   : > { %1453 = vmatmul.mubr.bf16.gmra.mrb[56].mxu1 %v2792_v42  ;;  %v1068_v42 = vpop.permute.xlu1 %1067 }
 0x180   : > { %1460 = vmatprep.mubr.bf16.mxu1 %v2793_v17 }
 0x187   : > { %1461 = vmatmul.mubr.bf16.gmra.mrb[60].mxu1 %v2795_v15 }
 0x188   : > { %1468 = vmatprep.mubr.bf16.mxu1 %v2796_v43 }
 0x18f   : > { %1469 = vmatmul.mubr.bf16.gmra.mrb[64].mxu1 %v2798_v13 }
 0x190   : > { %1476 = vmatprep.mubr.bf16.mxu1 %v2799_v44 }
 0x197   : > { %1477 = vmatmul.mubr.bf16.gmra.mrb[68].mxu1 %v2801_v11 }
 0x198   : > { %1484 = vmatprep.mubr.bf16.mxu1 %v2802_v45 }
 0x19f   : > { %1485 = vmatmul.mubr.bf16.gmra.mrb[72].mxu1 %v2804_v46  ;;  %v3470_v46 = vpop.permute.xlu0 %1152 }
 0x1a0   : > { %1492 = vmatprep.mubr.bf16.mxu1 %v2805_v47 }
 0x1a7   : > { %1493 = vmatmul.mubr.bf16.gmra.mrb[76].mxu1 %v2807_v48  ;;  %v3472_v48 = vpop.permute.xlu1 %1157 }
 0x202   : > { %v2415_v57 = vpop.f32.mrb[16].mxu1 }
 0x203   : > { %v2416_v59 = vpop.f32.mrb[17].mxu1 }
 0x204   : > { %v2417_v60 = vadd.f32 %v2416_v59, %v2415_v57  ;;  %v2418_v61 = vpop.f32.mrb[18].mxu1  ;;  %v1073_v59 = vpop.permute.xlu0 %1072 }
 0x205   : > { %v2419_v62 = vpop.f32.mrb[19].mxu1 }
 0x206   : > { %v1375_v63 = vadd.f32 %v2417_v60, %v1023_v16  ;;  %v2420_v0 = vadd.f32 %v2419_v62, %v2418_v61 }
 0x208   : > { %v1378_v20 = vadd.f32 %v2420_v0, %v1028_v50  ;;  %v1501_v22 = vmax.f32 %v1375_v63, 0.0  ;;  %v1078_v63 = vpop.permute.xlu1 %1077 }
 0x20a   : > { %v1502_v23 = vmax.f32 %v1378_v20, 0.0  ;;  %v2421_v41 = vpop.f32.mrb[20].mxu1 }
 0x20b   : > { %v2422_v9 = vpop.f32.mrb[21].mxu1 }
 0x20c   : > { %v3460_v19 = vpack.c.bf16 %v1502_v23, %v1501_v22  ;;  %v2423_v7 = vadd.f32 %v2422_v9, %v2421_v41  ;;  %v2424_v5 = vpop.f32.mrb[22].mxu1  ;;  %v3476_v23 = vpop.permute.xlu0 %1162 }
 0x20d   : > { %v2425_v25 = vpop.f32.mrb[23].mxu1 }
 0x20e   : > { %v1383_v26 = vadd.f32 %v2423_v7, %v1033_v14  ;;  %v2426_v24 = vadd.f32 %v2425_v25, %v2424_v5 }
 0x210   : > { %v1386_v27 = vadd.f32 %v2426_v24, %v1038_v53  ;;  %v1503_v8 = vmax.f32 %v1383_v26, 0.0 }
 0x212   : > { %v1504_v10 = vmax.f32 %v1386_v27, 0.0  ;;  %v2427_v28 = vpop.f32.mrb[24].mxu1  ;;  %v1083_v27 = vpop.permute.xlu0 %1082 }
 0x213   : > { %v2428_v6 = vpop.f32.mrb[25].mxu1 }
 0x214   : > { %v3464_v30 = vpack.c.bf16 %v1504_v10, %v1503_v8  ;;  %v2429_v4 = vadd.f32 %v2428_v6, %v2427_v28  ;;  %v2430_v31 = vpop.f32.mrb[26].mxu1 }
 0x215   : > { %v2431_v33 = vpop.f32.mrb[27].mxu1 }
 0x216   : > { %v1391_v34 = vadd.f32 %v2429_v4, %v1043_v56  ;;  %v2432_v35 = vadd.f32 %v2431_v33, %v2430_v31 }
 0x218   : > { %v1394_v36 = vadd.f32 %v2432_v35, %v1048_v58  ;;  %v1505_v38 = vmax.f32 %v1391_v34, 0.0 }
 0x21a   : > { %v1506_v39 = vmax.f32 %v1394_v36, 0.0  ;;  %v2433_v40 = vpop.f32.mrb[28].mxu1 }
 0x21b   : > { %v2434_v17 = vpop.f32.mrb[29].mxu1 }
 0x21c   : > { %v3468_v15 = vpack.c.bf16 %v1506_v39, %v1505_v38  ;;  %v2435_v43 = vadd.f32 %v2434_v17, %v2433_v40  ;;  %v2436_v13 = vpop.f32.mrb[30].mxu1  ;;  %v3484_v38 = vpop.permute.xlu0 %1172 }
 0x21d   : > { %v2437_v44 = vpop.f32.mrb[31].mxu1 }
 0x21e   : > { %v1399_v11 = vadd.f32 %v2435_v43, %v1053_v3  ;;  %v2438_v45 = vadd.f32 %v2437_v44, %v2436_v13  ;;  %v3480_v3 = vpop.permute.xlu1 %1167 }
 0x220   : > { %v1402_v47 = vadd.f32 %v2438_v45, %v1058_v54  ;;  %v1507_v16 = vmax.f32 %v1399_v11, 0.0 }
 0x222   : > { %v1508_v50 = vmax.f32 %v1402_v47, 0.0  ;;  %v2439_v14 = vpop.f32.mrb[32].mxu1  ;;  %v1088_v6 = vpop.permute.xlu1 %1087 }
 0x223   : > { %v2440_v53 = vpop.f32.mrb[33].mxu1  ;;  %v1093_v47 = vpop.permute.xlu0 %1092 }
 0x224   : > { %v3474_v56 = vpack.c.bf16 %v1508_v50, %v1507_v16  ;;  %v2441_v57 = vadd.f32 %v2440_v53, %v2439_v14  ;;  %v2442_v58 = vpop.f32.mrb[34].mxu1 }
 0x225   : > { %v2443_v60 = vpop.f32.mrb[35].mxu1 }
 0x226   : > { %v1407_v61 = vadd.f32 %v2441_v57, %v1063_v37  ;;  %v2444_v62 = vadd.f32 %v2443_v60, %v2442_v58  ;;  %v3486_v40 = vpop.permute.xlu1 %1177 }
 0x228   : > { %v1410_v0 = vadd.f32 %v2444_v62, %v1068_v42  ;;  %v1509_v2 = vmax.f32 %v1407_v61, 0.0 }
 0x22a   : > { %v1510_v20 = vmax.f32 %v1410_v0, 0.0  ;;  %v2445_v22 = vpop.f32.mrb[36].mxu1  ;;  %v1098_v53 = vpop.permute.xlu1 %1097 }
 0x22b   : > { %v2446_v41 = vpop.f32.mrb[37].mxu1 }
 0x22c   : > { %v3478_v9 = vpack.c.bf16 %v1510_v20, %v1509_v2  ;;  %v2447_v7 = vadd.f32 %v2446_v41, %v2445_v22  ;;  %v2448_v5 = vpop.f32.mrb[38].mxu1 }
 0x22d   : > { %v2449_v25 = vpop.f32.mrb[39].mxu1 }
 0x22e   : > { %v1415_v26 = vadd.f32 %v2447_v7, %v1073_v59  ;;  %v2450_v24 = vadd.f32 %v2449_v25, %v2448_v5 }
 0x230   : > { %v1418_v54 = vadd.f32 %v2450_v24, %v1078_v63  ;;  %v1511_v8 = vmax.f32 %v1415_v26, 0.0 }
 0x232   : > { %v1512_v10 = vmax.f32 %v1418_v54, 0.0  ;;  %v2451_v28 = vpop.f32.mrb[40].mxu1 }
 0x233   : > { %v2452_v4 = vpop.f32.mrb[41].mxu1 }
 0x234   : > { %v3482_v31 = vpack.c.bf16 %v1512_v10, %v1511_v8  ;;  %v2453_v33 = vadd.f32 %v2452_v4, %v2451_v28  ;;  %v2454_v34 = vpop.f32.mrb[42].mxu1 }
 0x235   : > { %v2455_v35 = vpop.f32.mrb[43].mxu1 }
 0x236   : > { %v1423_v36 = vadd.f32 %v2453_v33, %v1083_v27  ;;  %v2456_v37 = vadd.f32 %v2455_v35, %v2454_v34 }
 0x238   : > { %v1426_v39 = vadd.f32 %v2456_v37, %v1088_v6  ;;  %v1513_v42 = vmax.f32 %v1423_v36, 0.0 }
 0x23a   : > { %v1514_v17 = vmax.f32 %v1426_v39, 0.0  ;;  %v2457_v43 = vpop.f32.mrb[44].mxu1 }
 0x23b   : > { %v2458_v13 = vpop.f32.mrb[45].mxu1 }
 0x23c   : > { %v3488_v44 = vpack.c.bf16 %v1514_v17, %v1513_v42  ;;  %v2459_v11 = vadd.f32 %v2458_v13, %v2457_v43  ;;  %v2460_v45 = vpop.f32.mrb[46].mxu1 }
 0x23d   : > { %v2461_v16 = vpop.f32.mrb[47].mxu1 }
 0x23e   : > { %v1431_v50 = vadd.f32 %v2459_v11, %v1093_v47  ;;  %v2462_v14 = vadd.f32 %v2461_v16, %v2460_v45 }
 0x240   : > { %v1434_v57 = vadd.f32 %v2462_v14, %v1098_v53  ;;  %v1515_v58 = vmax.f32 %v1431_v50, 0.0 }
 0x242   : > { %v1516_v59 = vmax.f32 %v1434_v57, 0.0  ;;  %v2463_v60 = vpop.f32.mrb[48].mxu1 }
 0x243   : > { %v2464_v61 = vpop.f32.mrb[49].mxu1 }
 0x244   : > { %v3490_v62 = vpack.c.bf16 %v1516_v59, %v1515_v58  ;;  %v2465_v63 = vadd.f32 %v2464_v61, %v2463_v60  ;;  %v2466_v0 = vpop.f32.mrb[50].mxu1 }
 0x245   : > { %v2467_v2 = vpop.f32.mrb[51].mxu1 }
 0x246   : > { %v1439_v20 = vadd.f32 %v2465_v63, %v3441_v18  ;;  %v2468_v22 = vadd.f32 %v2467_v2, %v2466_v0 }
 0x248   : > { %v1442_v41 = vadd.f32 %v2468_v22, %v3443_v49  ;;  %v1517_v7 = vmax.f32 %v1439_v20, 0.0 }
 0x24a   : > { %v1518_v5 = vmax.f32 %v1442_v41, 0.0  ;;  %v2469_v25 = vpop.f32.mrb[52].mxu1 }
 0x24b   : > { %v2470_v26 = vpop.f32.mrb[53].mxu1 }
 0x24c   : > { %v2471_v24 = vadd.f32 %v2470_v26, %v2469_v25  ;;  %v2472_v54 = vpop.f32.mrb[54].mxu1  ;;  %v1541_v27 = vpack.c.bf16 %v1518_v5, %v1517_v7 }
 0x24d   : > { %v2473_v8 = vpop.f32.mrb[55].mxu1 }
 0x24e   : > { %v1447_v10 = vadd.f32 %v2471_v24, %v3445_v51  ;;  %v2474_v28 = vadd.f32 %v2473_v8, %v2472_v54  ;;  %2511 = vmatprep.subr.bf16.mxu0 %v1541_v27 }
 0x24f   : > { %2512 = vmatpush3.bf16.msra.mxu0 %v3460_v19 }
 0x250   : > { %v1450_v6 = vadd.f32 %v2474_v28, %v3447_v52  ;;  %v1519_v18 = vmax.f32 %v1447_v10, 0.0 }
 0x252   : > { %v1520_v4 = vmax.f32 %v1450_v6, 0.0  ;;  %v2475_v33 = vpop.f32.mrb[56].mxu1 }
 0x253   : > { %v2476_v49 = vpop.f32.mrb[57].mxu1 }
 0x254   : > { %v2477_v34 = vadd.f32 %v2476_v49, %v2475_v33  ;;  %v2478_v35 = vpop.f32.mrb[58].mxu1  ;;  %v1542_v36 = vpack.c.bf16 %v1520_v4, %v1519_v18 }
 0x255   : > { %v2479_v37 = vpop.f32.mrb[59].mxu1 }
 0x256   : > { %v1455_v39 = vadd.f32 %v2477_v34, %v3449_v12  ;;  %v2480_v42 = vadd.f32 %v2479_v37, %v2478_v35  ;;  %2513 = vmatprep.subr.bf16.mxu0 %v1542_v36 }
 0x257   : > { %2514 = vmatpush3.bf16.msra.mxu0 %v3464_v30 }
 0x258   : > { %v1458_v51 = vadd.f32 %v2480_v42, %v3451_v55  ;;  %v1521_v17 = vmax.f32 %v1455_v39, 0.0 }
 0x25a   : > { %v1522_v19 = vmax.f32 %v1458_v51, 0.0  ;;  %v2481_v43 = vpop.f32.mrb[60].mxu1  ;;  %v2817_v51 = vld [vmem:[%s3708_s5 + $0x34] ss:$8 sps:$4 sm:$0xff]  }
 0x25b   : > { %v2482_v52 = vpop.f32.mrb[61].mxu1 }
 0x25c   : > { %v2483_v13 = vadd.f32 %v2482_v52, %v2481_v43  ;;  %v2484_v11 = vpop.f32.mrb[62].mxu1  ;;  %v1543_v45 = vpack.c.bf16 %v1522_v19, %v1521_v17  ;;  %v2819_v17 = vld [vmem:[%s3708_s5 + $0x30] ss:$8 sps:$4 sm:$0xff]   ;;  %v2820_v19 = vld [vmem:[%s3708_s5 + $0x44] ss:$8 sps:$4 sm:$0xff]  }
 0x25d   : > { %v2485_v47 = vpop.f32.mrb[63].mxu1  ;;  %v2822_v43 = vld [vmem:[%s3708_s5 + $0x40] ss:$8 sps:$4 sm:$0xff]   ;;  %v2823_v52 = vld [vmem:[%s3708_s5 + $0x54] ss:$8 sps:$4 sm:$0xff]  }
 0x25e   : > { %v1463_v16 = vadd.f32 %v2483_v13, %v3453_v1  ;;  %v2486_v50 = vadd.f32 %v2485_v47, %v2484_v11  ;;  %2515 = vmatprep.subr.bf16.mxu0 %v1543_v45  ;;  %v2825_v13 = vld [vmem:[%s3708_s5 + $0x50] ss:$8 sps:$4 sm:$0xff]   ;;  %v2826_v11 = vld [vmem:[%s3708_s5 + $0x64] ss:$8 sps:$4 sm:$0xff]   ;;  %v2828_v45 = vld [vmem:[%s3708_s5 + $0x60] ss:$8 sps:$4 sm:$0xff]  }
 0x25f   : > { %2516 = vmatpush3.bf16.msra.mxu0 %v3468_v15  ;;  %v2829_v47 = vld [vmem:[%s3708_s5 + $0x74] ss:$8 sps:$4 sm:$0xff]  }
 0x260   : > { %v1466_v12 = vadd.f32 %v2486_v50, %v3458_v21  ;;  %v1523_v14 = vmax.f32 %v1463_v16, 0.0  ;;  %v2831_v16 = vld [vmem:[%s3708_s5 + $0x70] ss:$8 sps:$4 sm:$0xff]   ;;  %v2832_v50 = vld [vmem:[%s3708_s5 + $0x84] ss:$8 sps:$4 sm:$0xff]  }
 0x262   : > { %v1524_v30 = vmax.f32 %v1466_v12, 0.0  ;;  %v2487_v53 = vpop.f32.mrb[64].mxu1  ;;  %v2834_v12 = vld [vmem:[%s3708_s5 + $0x80] ss:$8 sps:$4 sm:$0xff]  }
 0x263   : > { %v2488_v55 = vpop.f32.mrb[65].mxu1 }
 0x264   : > { %v2489_v57 = vadd.f32 %v2488_v55, %v2487_v53  ;;  %v2490_v58 = vpop.f32.mrb[66].mxu1  ;;  %v1544_v59 = vpack.c.bf16 %v1524_v30, %v1523_v14  ;;  %v2835_v14 = vld [vmem:[%s3708_s5 + $0x94] ss:$8 sps:$4 sm:$0xff]   ;;  %v2837_v30 = vld [vmem:[%s3708_s5 + $0x90] ss:$8 sps:$4 sm:$0xff]  }
 0x265   : > { %v2491_v60 = vpop.f32.mrb[67].mxu1  ;;  %v2838_v53 = vld [vmem:[%s3708_s5 + $0xa4] ss:$8 sps:$4 sm:$0xff]   ;;  %v2840_v55 = vld [vmem:[%s3708_s5 + $0xa0] ss:$8 sps:$4 sm:$0xff]  }
 0x266   : > { %v1471_v61 = vadd.f32 %v2489_v57, %v3462_v29  ;;  %v2492_v63 = vadd.f32 %v2491_v60, %v2490_v58  ;;  %2517 = vmatprep.subr.bf16.mxu0 %v1544_v59  ;;  %v2841_v57 = vld [vmem:[%s3708_s5 + $0xb4] ss:$8 sps:$4 sm:$0xff]   ;;  %v2843_v58 = vld [vmem:[%s3708_s5 + $0xb0] ss:$8 sps:$4 sm:$0xff]   ;;  %v2844_v59 = vld [vmem:[%s3708_s5 + $0xc4] ss:$8 sps:$4 sm:$0xff]  }
 0x267   : > { %2518 = vmatpush3.bf16.msra.mxu0 %v3474_v56  ;;  %v2846_v60 = vld [vmem:[%s3708_s5 + $0xc0] ss:$8 sps:$4 sm:$0xff]  }
 0x268   : > { %v1474_v1 = vadd.f32 %v2492_v63, %v3466_v32  ;;  %v1525_v0 = vmax.f32 %v1471_v61, 0.0  ;;  %v2847_v61 = vld [vmem:[%s3708_s5 + $0xd4] ss:$8 sps:$4 sm:$0xff]   ;;  %v2849_v63 = vld [vmem:[%s3708_s5 + $0xd0] ss:$8 sps:$4 sm:$0xff]  }
 0x26a   : > { %v1526_v15 = vmax.f32 %v1474_v1, 0.0  ;;  %v2493_v2 = vpop.f32.mrb[68].mxu1  ;;  %v2850_v1 = vld [vmem:[%s3708_s5 + $0xe4] ss:$8 sps:$4 sm:$0xff]  }
 0x26b   : > { %v2494_v21 = vpop.f32.mrb[69].mxu1 }
 0x26c   : > { %v2495_v20 = vadd.f32 %v2494_v21, %v2493_v2  ;;  %v2496_v22 = vpop.f32.mrb[70].mxu1  ;;  %v1545_v41 = vpack.c.bf16 %v1526_v15, %v1525_v0  ;;  %v2852_v0 = vld [vmem:[%s3708_s5 + $0xe0] ss:$8 sps:$4 sm:$0xff]   ;;  %v2853_v15 = vld [vmem:[%s3708_s5 + $0xf4] ss:$8 sps:$4 sm:$0xff]   ;;  %v3609_v21 = vpop.permute.xlu0 %1695 }
 0x26d   : > { %v2497_v7 = vpop.f32.mrb[71].mxu1  ;;  %v2855_v2 = vld [vmem:[%s3708_s5 + $0xf0] ss:$8 sps:$4 sm:$0xff]  }
 0x26e   : > { %v1479_v5 = vadd.f32 %v2495_v20, %v3470_v46  ;;  %v2498_v25 = vadd.f32 %v2497_v7, %v2496_v22  ;;  %2519 = vmatprep.subr.bf16.mxu0 %v1545_v41  ;;  %v3611_v20 = vpop.permute.xlu1 %1700 }
 0x26f   : > { %2520 = vmatpush3.bf16.msra.mxu0 %v3478_v9 }
 0x270   : > { %v1482_v29 = vadd.f32 %v2498_v25, %v3472_v48  ;;  %v1527_v26 = vmax.f32 %v1479_v5, 0.0  ;;  %v1616_v22 = vpop.permute.xlu0 %1615 }
 0x272   : > { %v1528_v56 = vmax.f32 %v1482_v29, 0.0  ;;  %v2499_v24 = vpop.f32.mrb[72].mxu1  ;;  %v1621_v41 = vpop.permute.xlu1 %1620 }
 0x273   : > { %v2500_v32 = vpop.f32.mrb[73].mxu1 }
 0x274   : > { %v2501_v54 = vadd.f32 %v2500_v32, %v2499_v24  ;;  %v2502_v27 = vpop.f32.mrb[74].mxu1  ;;  %v1546_v8 = vpack.c.bf16 %v1528_v56, %v1527_v26  ;;  %v3613_v7 = vpop.permute.xlu0 %1705 }
 0x275   : > { %v2503_v10 = vpop.f32.mrb[75].mxu1 }
 0x276   : > { %v1487_v28 = vadd.f32 %v2501_v54, %v3476_v23  ;;  %v2504_v6 = vadd.f32 %v2503_v10, %v2502_v27  ;;  %2521 = vmatprep.subr.bf16.mxu0 %v1546_v8  ;;  %v3615_v5 = vpop.permute.xlu1 %1710 }
 0x277   : > { %2522 = vmatpush3.bf16.msra.mxu0 %v3482_v31 }
 0x278   : > { %v1490_v46 = vadd.f32 %v2504_v6, %v3480_v3  ;;  %v1529_v18 = vmax.f32 %v1487_v28, 0.0  ;;  %v2808_v3 = vld [vmem:[%s3708_s5] ss:$8 sps:$4 sm:$0xff]   ;;  %v1626_v25 = vpop.permute.xlu0 %1625 }
 0x27a   : > { %v1530_v9 = vmax.f32 %v1490_v46, 0.0  ;;  %v2505_v4 = vpop.f32.mrb[76].mxu1  ;;  %v1631_v29 = vpop.permute.xlu1 %1630 }
 0x27b   : > { %v2506_v48 = vpop.f32.mrb[77].mxu1 }
 0x27c   : > { %v2507_v33 = vadd.f32 %v2506_v48, %v2505_v4  ;;  %v2508_v49 = vpop.f32.mrb[78].mxu1  ;;  %v1547_v34 = vpack.c.bf16 %v1530_v9, %v1529_v18  ;;  %v3617_v26 = vpop.permute.xlu0 %1715  ;;  %v3624_v18 = vld [vmem:[%s3710_s7] sm:$0xff] }
 0x27d   : > { %v2509_v35 = vpop.f32.mrb[79].mxu1  ;;  %v2371_v4 = vcombine.high %v3624_v18, %v3624_v18 }
 0x27e   : > { %v1495_v36 = vadd.f32 %v2507_v33, %v3484_v38  ;;  %v2510_v37 = vadd.f32 %v2509_v35, %v2508_v49  ;;  %2523 = vmatprep.subr.bf16.mxu0 %v1547_v34  ;;  %v2811_v38 = vld [vmem:[%s3708_s5 + $0x14] ss:$8 sps:$4 sm:$0xff]   ;;  %v3619_v56 = vpop.permute.xlu1 %1720 }
 0x27f   : > { %2524 = vmatpush3.bf16.msra.mxu0 %v3488_v44  ;;  %v2814_v44 = vld [vmem:[%s3708_s5 + $0x24] ss:$8 sps:$4 sm:$0xff]   ;;  %2188 = vmatprep.mubr.bf16.mxu1 %v2371_v4 }
 0x280   : > { %v1498_v23 = vadd.f32 %v2510_v37, %v3486_v40  ;;  %v1531_v39 = vmax.f32 %v1495_v36, 0.0  ;;  %v2813_v40 = vld [vmem:[%s3708_s5 + $0x10] ss:$8 sps:$4 sm:$0xff]   ;;  %v1636_v24 = vpop.permute.xlu0 %1635 }
 0x282   : > { %v1532_v31 = vmax.f32 %v1498_v23, 0.0  ;;  %v1641_v54 = vpop.permute.xlu1 %1640 }
 0x284   : > { %v1548_v42 = vpack.c.bf16 %v1532_v31, %v1531_v39  ;;  %v3626_v9 = vpop.permute.xlu0 %1725 }
 0x286   : > { %2525 = vmatprep.subr.bf16.mxu0 %v1548_v42  ;;  %v3630_v33 = vpop.permute.xlu1 %1730 }
 0x287   : > { %2526 = vmatpush3.bf16.msra.mxu0 %v3490_v62  ;;  %v2816_v62 = vld [vmem:[%s3708_s5 + $0x20] ss:$8 sps:$4 sm:$0xff]  }
 0x288   : > { %v1646_v31 = vpop.permute.xlu0 %1645 }
 0x28a   : > { %1966 = vmatmul.mubr.bf16.vlgmr.msra.gmra.mrb[16].mxu0 %v2808_v3 }
 0x28b   : > { %1973 = vmatprep.mubr.bf16.mxu0 %v2811_v38 }
 0x292   : > { %1974 = vmatmul.mubr.bf16.gmra.mrb[20].mxu0 %v2813_v40  ;;  %v1651_v40 = vpop.permute.xlu1 %1650 }
 0x293   : > { %1981 = vmatprep.mubr.bf16.mxu0 %v2814_v44 }
 0x29a   : > { %1982 = vmatmul.mubr.bf16.gmra.mrb[24].mxu0 %v2816_v62 }
 0x29b   : > { %1989 = vmatprep.mubr.bf16.mxu0 %v2817_v51 }
 0x2a2   : > { %1990 = vmatmul.mubr.bf16.gmra.mrb[28].mxu0 %v2819_v17 }
 0x2a3   : > { %1997 = vmatprep.mubr.bf16.mxu0 %v2820_v19  ;;  %v3634_v19 = vpop.permute.xlu0 %1735 }
 0x2aa   : > { %1998 = vmatmul.mubr.bf16.gmra.mrb[32].mxu0 %v2822_v43 }
 0x2ab   : > { %2005 = vmatprep.mubr.bf16.mxu0 %v2823_v52 }
 0x2b2   : > { %2006 = vmatmul.mubr.bf16.gmra.mrb[36].mxu0 %v2825_v13 }
 0x2b3   : > { %2013 = vmatprep.mubr.bf16.mxu0 %v2826_v11 }
 0x2ba   : > { %2014 = vmatmul.mubr.bf16.gmra.mrb[40].mxu0 %v2828_v45  ;;  %v3638_v45 = vpop.permute.xlu1 %1740 }
 0x2bb   : > { %2021 = vmatprep.mubr.bf16.mxu0 %v2829_v47 }
 0x2c2   : > { %2022 = vmatmul.mubr.bf16.gmra.mrb[44].mxu0 %v2831_v16 }
 0x2c3   : > { %2029 = vmatprep.mubr.bf16.mxu0 %v2832_v50 }
 0x2ca   : > { %2030 = vmatmul.mubr.bf16.gmra.mrb[48].mxu0 %v2834_v12 }
 0x2cb   : > { %2037 = vmatprep.mubr.bf16.mxu0 %v2835_v14  ;;  %v1656_v14 = vpop.permute.xlu0 %1655 }
 0x2d2   : > { %2038 = vmatmul.mubr.bf16.gmra.mrb[52].mxu0 %v2837_v30 }
 0x2d3   : > { %2045 = vmatprep.mubr.bf16.mxu0 %v2838_v53 }
 0x2da   : > { %2046 = vmatmul.mubr.bf16.gmra.mrb[56].mxu0 %v2840_v55 }
 0x2db   : > { %2053 = vmatprep.mubr.bf16.mxu0 %v2841_v57  ;;  %v1661_v57 = vpop.permute.xlu1 %1660 }
 0x2e2   : > { %2054 = vmatmul.mubr.bf16.gmra.mrb[60].mxu0 %v2843_v58 }
 0x2e3   : > { %2061 = vmatprep.mubr.bf16.mxu0 %v2844_v59 }
 0x2ea   : > { %2062 = vmatmul.mubr.bf16.gmra.mrb[64].mxu0 %v2846_v60 }
 0x2eb   : > { %2069 = vmatprep.mubr.bf16.mxu0 %v2847_v61 }
 0x2f2   : > { %2070 = vmatmul.mubr.bf16.gmra.mrb[68].mxu0 %v2849_v63 }
 0x2f3   : > { %2077 = vmatprep.mubr.bf16.mxu0 %v2850_v1 }
 0x2fa   : > { %2078 = vmatmul.mubr.bf16.gmra.mrb[72].mxu0 %v2852_v0 }
 0x2fb   : > { %2085 = vmatprep.mubr.bf16.mxu0 %v2853_v15  ;;  %v3642_v15 = vpop.permute.xlu0 %1745 }
 0x302   : > { %2086 = vmatmul.mubr.bf16.gmra.mrb[76].mxu0 %v2855_v2 }
 0x35d   : > { %v2527_v32 = vpop.f32.mrb[16].mxu0 }
 0x35e   : > { %v2528_v27 = vpop.f32.mrb[17].mxu0 }
 0x35f   : > { %v2529_v8 = vadd.f32 %v2528_v27, %v2527_v32  ;;  %v2530_v10 = vpop.f32.mrb[18].mxu0 }
 0x360   : > { %v2531_v28 = vpop.f32.mrb[19].mxu0 }
 0x361   : > { %v1968_v6 = vadd.f32 %v2529_v8, %v1616_v22  ;;  %v2532_v46 = vadd.f32 %v2531_v28, %v2530_v10  ;;  %v3644_v22 = vpop.permute.xlu1 %1750  ;;  %v1666_v8 = vpop.permute.xlu0 %1665 }
 0x363   : > { %v1971_v48 = vadd.f32 %v2532_v46, %v1621_v41  ;;  %v2094_v49 = vmax.f32 %v1968_v6, 0.0 }
 0x365   : > { %v2095_v34 = vmax.f32 %v1971_v48, 0.0  ;;  %v2533_v35 = vpop.f32.mrb[20].mxu0  ;;  %v1671_v46 = vpop.permute.xlu1 %1670 }
 0x366   : > { %v2534_v36 = vpop.f32.mrb[21].mxu0 }
 0x367   : > { %v3632_v37 = vpack.c.bf16 %v2095_v34, %v2094_v49  ;;  %v2535_v23 = vadd.f32 %v2534_v36, %v2533_v35  ;;  %v2536_v39 = vpop.f32.mrb[22].mxu0  ;;  %v3648_v35 = vpop.permute.xlu0 %1755 }
 0x368   : > { %v2537_v42 = vpop.f32.mrb[23].mxu0 }
 0x369   : > { %v1976_v3 = vadd.f32 %v2535_v23, %v1626_v25  ;;  %v2538_v38 = vadd.f32 %v2537_v42, %v2536_v39  ;;  %v3652_v42 = vpop.permute.xlu1 %1760 }
 0x36b   : > { %v1979_v44 = vadd.f32 %v2538_v38, %v1631_v29  ;;  %v2096_v62 = vmax.f32 %v1976_v3, 0.0 }
 0x36d   : > { %v2097_v51 = vmax.f32 %v1979_v44, 0.0  ;;  %v2539_v17 = vpop.f32.mrb[24].mxu0 }
 0x36e   : > { %v2540_v43 = vpop.f32.mrb[25].mxu0 }
 0x36f   : > { %v3636_v52 = vpack.c.bf16 %v2097_v51, %v2096_v62  ;;  %v2541_v13 = vadd.f32 %v2540_v43, %v2539_v17  ;;  %v2542_v11 = vpop.f32.mrb[26].mxu0  ;;  %v1676_v62 = vpop.permute.xlu0 %1675 }
 0x370   : > { %v2543_v47 = vpop.f32.mrb[27].mxu0 }
 0x371   : > { %v1984_v16 = vadd.f32 %v2541_v13, %v1636_v24  ;;  %v2544_v50 = vadd.f32 %v2543_v47, %v2542_v11  ;;  %v1681_v13 = vpop.permute.xlu1 %1680 }
 0x373   : > { %v1987_v12 = vadd.f32 %v2544_v50, %v1641_v54  ;;  %v2098_v30 = vmax.f32 %v1984_v16, 0.0 }
 0x375   : > { %v2099_v53 = vmax.f32 %v1987_v12, 0.0  ;;  %v2545_v55 = vpop.f32.mrb[28].mxu0 }
 0x376   : > { %v2546_v58 = vpop.f32.mrb[29].mxu0 }
 0x377   : > { %v3640_v59 = vpack.c.bf16 %v2099_v53, %v2098_v30  ;;  %v2547_v60 = vadd.f32 %v2546_v58, %v2545_v55  ;;  %v2548_v61 = vpop.f32.mrb[30].mxu0  ;;  %v3656_v53 = vpop.permute.xlu0 %1765 }
 0x378   : > { %v2549_v63 = vpop.f32.mrb[31].mxu0 }
 0x379   : > { %v1992_v1 = vadd.f32 %v2547_v60, %v1646_v31  ;;  %v2550_v0 = vadd.f32 %v2549_v63, %v2548_v61 }
 0x37b   : > { %v1995_v2 = vadd.f32 %v2550_v0, %v1651_v40  ;;  %v2100_v41 = vmax.f32 %v1992_v1, 0.0 }
 0x37d   : > { %v2101_v25 = vmax.f32 %v1995_v2, 0.0  ;;  %v2551_v29 = vpop.f32.mrb[32].mxu0 }
 0x37e   : > { %v2552_v24 = vpop.f32.mrb[33].mxu0 }
 0x37f   : > { %v3646_v32 = vpack.c.bf16 %v2101_v25, %v2100_v41  ;;  %v2553_v54 = vadd.f32 %v2552_v24, %v2551_v29  ;;  %v2554_v27 = vpop.f32.mrb[34].mxu0  ;;  %v1686_v41 = vpop.permute.xlu0 %1685 }
 0x380   : > { %v2555_v10 = vpop.f32.mrb[35].mxu0 }
 0x381   : > { %v2000_v28 = vadd.f32 %v2553_v54, %v1656_v14  ;;  %v2556_v6 = vadd.f32 %v2555_v10, %v2554_v27 }
 0x383   : > { %v2003_v4 = vadd.f32 %v2556_v6, %v1661_v57  ;;  %v2102_v48 = vmax.f32 %v2000_v28, 0.0  ;;  %v3658_v57 = vpop.permute.xlu1 %1770 }
 0x385   : > { %v2103_v49 = vmax.f32 %v2003_v4, 0.0  ;;  %v2557_v34 = vpop.f32.mrb[36].mxu0 }
 0x386   : > { %v2558_v36 = vpop.f32.mrb[37].mxu0 }
 0x387   : > { %v3650_v23 = vpack.c.bf16 %v2103_v49, %v2102_v48  ;;  %v2559_v39 = vadd.f32 %v2558_v36, %v2557_v34  ;;  %v2560_v31 = vpop.f32.mrb[38].mxu0  ;;  %v1691_v54 = vpop.permute.xlu1 %1690 }
 0x388   : > { %v2561_v3 = vpop.f32.mrb[39].mxu0 }
 0x389   : > { %v2008_v38 = vadd.f32 %v2559_v39, %v1666_v8  ;;  %v2562_v40 = vadd.f32 %v2561_v3, %v2560_v31 }
 0x38b   : > { %v2011_v44 = vadd.f32 %v2562_v40, %v1671_v46  ;;  %v2104_v51 = vmax.f32 %v2008_v38, 0.0 }
 0x38d   : > { %v2105_v17 = vmax.f32 %v2011_v44, 0.0  ;;  %v2563_v43 = vpop.f32.mrb[40].mxu0 }
 0x38e   : > { %v2564_v11 = vpop.f32.mrb[41].mxu0 }
 0x38f   : > { %v3654_v47 = vpack.c.bf16 %v2105_v17, %v2104_v51  ;;  %v2565_v16 = vadd.f32 %v2564_v11, %v2563_v43  ;;  %v2566_v50 = vpop.f32.mrb[42].mxu0 }
 0x390   : > { %v2567_v12 = vpop.f32.mrb[43].mxu0 }
 0x391   : > { %v2016_v14 = vadd.f32 %v2565_v16, %v1676_v62  ;;  %v2568_v30 = vadd.f32 %v2567_v12, %v2566_v50 }
 0x393   : > { %v2019_v55 = vadd.f32 %v2568_v30, %v1681_v13  ;;  %v2106_v58 = vmax.f32 %v2016_v14, 0.0 }
 0x395   : > { %v2107_v60 = vmax.f32 %v2019_v55, 0.0  ;;  %v2569_v61 = vpop.f32.mrb[44].mxu0 }
 0x396   : > { %v2570_v63 = vpop.f32.mrb[45].mxu0 }
 0x397   : > { %v3660_v1 = vpack.c.bf16 %v2107_v60, %v2106_v58  ;;  %v2571_v0 = vadd.f32 %v2570_v63, %v2569_v61  ;;  %v2572_v2 = vpop.f32.mrb[46].mxu0 }
 0x398   : > { %v2573_v25 = vpop.f32.mrb[47].mxu0 }
 0x399   : > { %v2024_v29 = vadd.f32 %v2571_v0, %v1686_v41  ;;  %v2574_v24 = vadd.f32 %v2573_v25, %v2572_v2 }
 0x39b   : > { %v2027_v27 = vadd.f32 %v2574_v24, %v1691_v54  ;;  %v2108_v8 = vmax.f32 %v2024_v29, 0.0 }
 0x39d   : > { %v2109_v10 = vmax.f32 %v2027_v27, 0.0  ;;  %v2575_v28 = vpop.f32.mrb[48].mxu0 }
 0x39e   : > { %v2576_v6 = vpop.f32.mrb[49].mxu0 }
 0x39f   : > { %v3662_v46 = vpack.c.bf16 %v2109_v10, %v2108_v8  ;;  %v2577_v4 = vadd.f32 %v2576_v6, %v2575_v28  ;;  %v2578_v48 = vpop.f32.mrb[50].mxu0 }
 0x3a0   : > { %v2579_v49 = vpop.f32.mrb[51].mxu0 }
 0x3a1   : > { %v2032_v34 = vadd.f32 %v2577_v4, %v3609_v21  ;;  %v2580_v36 = vadd.f32 %v2579_v49, %v2578_v48 }
 0x3a3   : > { %v2035_v39 = vadd.f32 %v2580_v36, %v3611_v20  ;;  %v2110_v31 = vmax.f32 %v2032_v34, 0.0 }
 0x3a5   : > { %v2111_v3 = vmax.f32 %v2035_v39, 0.0  ;;  %v2581_v38 = vpop.f32.mrb[52].mxu0 }
 0x3a6   : > { %v2582_v40 = vpop.f32.mrb[53].mxu0 }
 0x3a7   : > { %v2583_v44 = vadd.f32 %v2582_v40, %v2581_v38  ;;  %v2584_v62 = vpop.f32.mrb[54].mxu0  ;;  %v2134_v51 = vpack.c.bf16 %v2111_v3, %v2110_v31 }
 0x3a8   : > { %v2585_v17 = vpop.f32.mrb[55].mxu0 }
 0x3a9   : > { %v2040_v43 = vadd.f32 %v2583_v44, %v3613_v7  ;;  %v2586_v13 = vadd.f32 %v2585_v17, %v2584_v62  ;;  %2623 = vmatprep.subr.bf16.mxu1 %v2134_v51 }
 0x3aa   : > { %2624 = vmatpush3.bf16.msra.mxu1 %v3632_v37 }
 0x3ab   : > { %v2043_v11 = vadd.f32 %v2586_v13, %v3615_v5  ;;  %v2112_v21 = vmax.f32 %v2040_v43, 0.0 }
 0x3ad   : > { %v2113_v16 = vmax.f32 %v2043_v11, 0.0  ;;  %v2587_v50 = vpop.f32.mrb[56].mxu0 }
 0x3ae   : > { %v2588_v20 = vpop.f32.mrb[57].mxu0 }
 0x3af   : > { %v2589_v12 = vadd.f32 %v2588_v20, %v2587_v50  ;;  %v2590_v14 = vpop.f32.mrb[58].mxu0  ;;  %v2135_v30 = vpack.c.bf16 %v2113_v16, %v2112_v21 }
 0x3b0   : > { %v2591_v55 = vpop.f32.mrb[59].mxu0 }
 0x3b1   : > { %v2048_v58 = vadd.f32 %v2589_v12, %v3617_v26  ;;  %v2592_v60 = vadd.f32 %v2591_v55, %v2590_v14  ;;  %2625 = vmatprep.subr.bf16.mxu1 %v2135_v30 }
 0x3b2   : > { %2626 = vmatpush3.bf16.msra.mxu1 %v3636_v52 }
 0x3b3   : > { %v2051_v7 = vadd.f32 %v2592_v60, %v3619_v56  ;;  %v2114_v61 = vmax.f32 %v2048_v58, 0.0 }
 0x3b5   : > { %v2115_v37 = vmax.f32 %v2051_v7, 0.0  ;;  %v2593_v63 = vpop.f32.mrb[60].mxu0  ;;  %v2370_v7 = vcombine.low %v3624_v18, %v3624_v18 }
 0x3b6   : > { %v2594_v5 = vpop.f32.mrb[61].mxu0 }
 0x3b7   : > { %v2595_v0 = vadd.f32 %v2594_v5, %v2593_v63  ;;  %v2596_v2 = vpop.f32.mrb[62].mxu0  ;;  %v2136_v41 = vpack.c.bf16 %v2115_v37, %v2114_v61  ;;  %v2147_v5 = vpop.permute.xlu0 %2146 }
 0x3b8   : > { %v2597_v25 = vpop.f32.mrb[63].mxu0 }
 0x3b9   : > { %v2056_v29 = vadd.f32 %v2595_v0, %v3626_v9  ;;  %v2598_v24 = vadd.f32 %v2597_v25, %v2596_v2  ;;  %2627 = vmatprep.subr.bf16.mxu1 %v2136_v41 }
 0x3ba   : > { %2628 = vmatpush3.bf16.msra.mxu1 %v3640_v59 }
 0x3bb   : > { %v2059_v26 = vadd.f32 %v2598_v24, %v3630_v33  ;;  %v2116_v54 = vmax.f32 %v2056_v29, 0.0 }
 0x3bd   : > { %v2117_v52 = vmax.f32 %v2059_v26, 0.0  ;;  %v2599_v27 = vpop.f32.mrb[64].mxu0 }
 0x3be   : > { %v2600_v56 = vpop.f32.mrb[65].mxu0 }
 0x3bf   : > { %v2601_v8 = vadd.f32 %v2600_v56, %v2599_v27  ;;  %v2602_v10 = vpop.f32.mrb[66].mxu0  ;;  %v2137_v28 = vpack.c.bf16 %v2117_v52, %v2116_v54 }
 0x3c0   : > { %v2603_v6 = vpop.f32.mrb[67].mxu0 }
 0x3c1   : > { %v2064_v4 = vadd.f32 %v2601_v8, %v3634_v19  ;;  %v2604_v48 = vadd.f32 %v2603_v6, %v2602_v10  ;;  %2629 = vmatprep.subr.bf16.mxu1 %v2137_v28 }
 0x3c2   : > { %2630 = vmatpush3.bf16.msra.mxu1 %v3646_v32 }
 0x3c3   : > { %v2067_v9 = vadd.f32 %v2604_v48, %v3638_v45  ;;  %v2118_v49 = vmax.f32 %v2064_v4, 0.0 }
 0x3c5   : > { %v2119_v59 = vmax.f32 %v2067_v9, 0.0  ;;  %v2605_v34 = vpop.f32.mrb[68].mxu0 }
 0x3c6   : > { %v2606_v33 = vpop.f32.mrb[69].mxu0 }
 0x3c7   : > { %v2607_v36 = vadd.f32 %v2606_v33, %v2605_v34  ;;  %v2608_v39 = vpop.f32.mrb[70].mxu0  ;;  %v2138_v31 = vpack.c.bf16 %v2119_v59, %v2118_v49 }
 0x3c8   : > { %v2609_v3 = vpop.f32.mrb[71].mxu0 }
 0x3c9   : > { %v2072_v38 = vadd.f32 %v2607_v36, %v3642_v15  ;;  %v2610_v40 = vadd.f32 %v2609_v3, %v2608_v39  ;;  %2631 = vmatprep.subr.bf16.mxu1 %v2138_v31 }
 0x3ca   : > { %2632 = vmatpush3.bf16.msra.mxu1 %v3650_v23 }
 0x3cb   : > { %v2075_v19 = vadd.f32 %v2610_v40, %v3644_v22  ;;  %v2120_v44 = vmax.f32 %v2072_v38, 0.0 }
 0x3cd   : > { %v2121_v32 = vmax.f32 %v2075_v19, 0.0  ;;  %v2611_v62 = vpop.f32.mrb[72].mxu0 }
 0x3ce   : > { %v2612_v45 = vpop.f32.mrb[73].mxu0 }
 0x3cf   : > { %v2613_v51 = vadd.f32 %v2612_v45, %v2611_v62  ;;  %v2614_v17 = vpop.f32.mrb[74].mxu0  ;;  %v2139_v43 = vpack.c.bf16 %v2121_v32, %v2120_v44 }
 0x3d0   : > { %v2615_v13 = vpop.f32.mrb[75].mxu0 }
 0x3d1   : > { %v2080_v11 = vadd.f32 %v2613_v51, %v3648_v35  ;;  %v2616_v21 = vadd.f32 %v2615_v13, %v2614_v17  ;;  %2633 = vmatprep.subr.bf16.mxu1 %v2139_v43 }
 0x3d2   : > { %2634 = vmatpush3.bf16.msra.mxu1 %v3654_v47 }
 0x3d3   : > { %v2083_v15 = vadd.f32 %v2616_v21, %v3652_v42  ;;  %v2122_v16 = vmax.f32 %v2080_v11, 0.0 }
 0x3d5   : > { %v2123_v23 = vmax.f32 %v2083_v15, 0.0  ;;  %v2617_v50 = vpop.f32.mrb[76].mxu0 }
 0x3d6   : > { %v2618_v22 = vpop.f32.mrb[77].mxu0 }
 0x3d7   : > { %v2619_v20 = vadd.f32 %v2618_v22, %v2617_v50  ;;  %v2620_v12 = vpop.f32.mrb[78].mxu0  ;;  %v2140_v14 = vpack.c.bf16 %v2123_v23, %v2122_v16 }
 0x3d8   : > { %v2621_v30 = vpop.f32.mrb[79].mxu0 }
 0x3d9   : > { %v2088_v55 = vadd.f32 %v2619_v20, %v3656_v53  ;;  %v2622_v58 = vadd.f32 %v2621_v30, %v2620_v12  ;;  %2635 = vmatprep.subr.bf16.mxu1 %v2140_v14 }
 0x3da   : > { %2636 = vmatpush3.bf16.msra.mxu1 %v3660_v1 }
 0x3db   : > { %v2091_v35 = vadd.f32 %v2622_v58, %v3658_v57  ;;  %v2124_v47 = vmax.f32 %v2088_v55, 0.0 }
 0x3dd   : > { %v2125_v60 = vmax.f32 %v2091_v35, 0.0 }
 0x3df   : > { %v2141_v42 = vpack.c.bf16 %v2125_v60, %v2124_v47 }
 0x3e1   : > { %2637 = vmatprep.subr.bf16.mxu1 %v2141_v42 }
 0x3e2   : > { %2638 = vmatpush3.bf16.msra.mxu1 %v3662_v46 }
 0x3e5   : > { %2189 = vmatmul.mubr.bf16.vlgmr.msra.gmra.mrb[80].mxu1 %v2370_v7 }
 0x4b8   : > { %v2639_v61 = vpop.f32.mrb[80].mxu1 }
 0x4b9   : > { %v2640_v37 = vpop.f32.mrb[81].mxu1 }
 0x4ba   : > { %v2641_v53 = vadd.f32 %v2640_v37, %v2639_v61  ;;  %v2642_v63 = vpop.f32.mrb[82].mxu1 }
 0x4bb   : > { %v2643_v57 = vpop.f32.mrb[83].mxu1 }
 0x4bc   : > { %v2191_v1 = vadd.f32 %v2641_v53, %v2147_v5 }
 0x4be   : > { %2196 = vst [vmem:[%s361_s20] sm:$0x7] %v2191_v1 }
 0x4bf PF: > { %s19_s11 = sadd.s32 1, %s2880_s11   ;;  %s3713_s30 = smov %s2876_s10 }
 0x4c0   : > { %p16_p5 = scmp.ge.s32.totalorder %s19_s11, 4   ;;  %s3714_s10 = smov %s3716_s12 }
 0x4c2   :  { %18 = sbr.rel (!%p16_p5) target bundleno = 2 (0x2), region = 86 }

</bundles_post_ra>
